<compile_context>
chip_gen: v6e
topology: v6e:2x2x1
jax: 0.10.0
libtpu: 0.0.40
codegen_flags: <defaults>
</compile_context>

<pallas_src>
import functools

import jax
import jax.numpy as jnp
from jax import lax
from jax.experimental import pallas as pl
from jax.experimental.pallas import tpu as pltpu


def _pick_batch_tile(n, max_tile=8):
    """Largest divisor of n that is <= max_tile (images per grid step)."""
    for t in range(min(n, max_tile), 0, -1):
        if n % t == 0:
            return t
    return 1


def _fusion_kernel(x1_ref, x2_ref, w3a_ref, w3b_ref, b3_ref, w1_ref, b1_ref,
                   o_ref, *, width, c_half, b_tile):
    """One grid step = B_TILE images of the batch.

    x1_ref, x2_ref : (B_TILE, C1, H*W) f32   flattened NCHW inputs (spatial on lanes)
    w3a_ref        : (Cout, 9*C1)      bf16  3x3 weights (BN scale folded), x1-half of K
    w3b_ref        : (Cout, 9*C1)      bf16  3x3 weights (BN scale folded), x2-half of K
    b3_ref         : (Cout, 1)         f32   folded BN bias (beta - mean * scale)
    w1_ref         : (Cout, Cout)      bf16  1x1 conv weights
    b1_ref         : (Cout, 1)         f32   1x1 conv bias
    o_ref          : (B_TILE, Cout, H*W) f32 output (flattened NCHW)
    """
    W = width
    C1 = c_half
    HW = x1_ref.shape[2]
    Cout = o_ref.shape[1]

    # Left/right image-border masks, generated in-kernel (no HBM input / BlockSpec).
    wcol = lax.broadcasted_iota(jnp.int32, (1, HW), 1) % W
    not_left = (wcol != 0).astype(jnp.float32)        # kills the (w-1) taps at w == 0
    not_right = (wcol != W - 1).astype(jnp.float32)   # kills the (w+1) taps at w == W-1

    # Tiny weights / biases, loaded once per grid step (hoisted out of the image loop).
    w3a = w3a_ref[...]            # (Cout, 9*C1) bf16
    w3b = w3b_ref[...]            # (Cout, 9*C1) bf16
    b3 = b3_ref[...]              # (Cout, 1)    f32
    w1 = w1_ref[...]              # (Cout, Cout) bf16
    b1 = b1_ref[...]              # (Cout, 1)    f32

    zpad = jnp.zeros((C1, W + 1), dtype=jnp.bfloat16)

    def one_image(b, carry):
        # Cast after the DMA: f32 in HBM, bf16 on the VPU/MXU (hidden under the copy).
        x1b = x1_ref[b].astype(jnp.bfloat16)             # (C1, H*W)
        x2b = x2_ref[b].astype(jnp.bfloat16)             # (C1, H*W)

        # Flat zero-padded row: [W+1 zeros | image (row-major) | W+1 zeros].  A 3x3 tap
        # at offset (kh, kw) is a *contiguous* lane slice of this row, fed straight into
        # an accumulating matmul -- the (9*Cin, H*W) im2col is never materialized.  The
        # zero pads handle the top/bottom rows; not_left/not_right fix the cross-row
        # wrap of the kw = 0/2 taps.
        x1f = jnp.concatenate([zpad, x1b, zpad], axis=1)  # (C1, H*W + 2W + 2)
        x2f = jnp.concatenate([zpad, x2b, zpad], axis=1)

        acc_c = jnp.zeros((Cout, HW), jnp.float32)        # kw == 1 taps (no mask)
        acc_l = jnp.zeros((Cout, HW), jnp.float32)        # kw == 0 taps (need not_left)
        acc_r = jnp.zeros((Cout, HW), jnp.float32)        # kw == 2 taps (need not_right)
        for kh in range(3):
            for kw in range(3):
                t = kh * 3 + kw
                start = (W + 1) + (kh - 1) * W + (kw - 1)
                p1 = x1f[:, start:start + HW]             # (C1, H*W)
                p2 = x2f[:, start:start + HW]             # (C1, H*W)
                wa = w3a[:, t * C1:(t + 1) * C1]          # (Cout, C1)
                wb = w3b[:, t * C1:(t + 1) * C1]          # (Cout, C1)
                # Split-K: no x1/x2 channel concat, two tiny MXU pushes per tap,
                # accumulated in f32 (chained adds -> MRB in-place accumulate on v7x).
                part = (jnp.dot(wa, p1, preferred_element_type=jnp.float32) +
                        jnp.dot(wb, p2, preferred_element_type=jnp.float32))
                if kw == 0:
                    acc_l = acc_l + part
                elif kw == 2:
                    acc_r = acc_r + part
                else:
                    acc_c = acc_c + part

        # Border masking grouped per kw column: only 2 masked (Cout, H*W) products.
        acc = acc_c + acc_l * not_left + acc_r * not_right

        # Folded BN bias + ReLU, then 1x1 conv + bias (bf16 operands, f32 accumulation).
        y = jnp.maximum(acc + b3, 0.0)                    # (Cout, H*W) f32
        z = jnp.dot(w1, y.astype(jnp.bfloat16),
                    preferred_element_type=jnp.float32) + b1
        o_ref[b] = z.astype(o_ref.dtype)
        return carry

    lax.fori_loop(0, b_tile, one_image, 0, unroll=True)


def feature_fusion_forward(x1, x2, w3, gamma, beta, running_mean, running_var,
                           w1, b1, eps=1e-5):
    """FeatureFusionModule_conv forward (eval-mode BN).

    x1, x2 : (N, C, H, W) f32   (C = num_classes each; channel concat folded into split-K)
    w3     : (C, 2C, 3, 3) f32  ConvBlock 3x3 conv weights (no bias)
    gamma, beta, running_mean, running_var : (C,) f32  BatchNorm2d parameters/stats
    w1     : (C, C, 1, 1) f32   1x1 conv weights
    b1     : (C,) f32           1x1 conv bias
    Returns (N, C, H, W) f32.
    """
    N, C1, H, W = x1.shape
    Cout = w3.shape[0]
    HW = H * W

    # ---- one-time parameter prep (fold BN scale into the 3x3 weights, in f32) ----
    scale = gamma / jnp.sqrt(running_var + eps)                        # (Cout,)
    w3f = w3 * scale[:, None, None, None]                              # (Cout, 2C1, 3, 3)
    # Split K into the x1-half / x2-half; (Cout, C1, 3, 3) -> (Cout, 3, 3, C1) ->
    # (Cout, 9*C1): column block t = kh*3 + kw holds the C1 channels of that tap,
    # matching the kernel's per-tap slicing.
    w3a = jnp.transpose(w3f[:, :C1], (0, 2, 3, 1)).reshape(Cout, 9 * C1).astype(jnp.bfloat16)
    w3b = jnp.transpose(w3f[:, C1:], (0, 2, 3, 1)).reshape(Cout, 9 * C1).astype(jnp.bfloat16)
    b3 = (beta - running_mean * scale).reshape(Cout, 1).astype(jnp.float32)
    w1m = w1.reshape(Cout, Cout).astype(jnp.bfloat16)
    b1v = b1.reshape(Cout, 1).astype(jnp.float32)

    # ---- activations: free (bitcast) reshape to lane-dense (N, C, H*W); NO dtype cast
    # here -- the f32 -> bf16 cast happens inside the kernel, after the DMA.
    x1f = x1.reshape(N, C1, HW)
    x2f = x2.reshape(N, C1, HW)

    b_tile = _pick_batch_tile(N)
    kernel = functools.partial(_fusion_kernel, width=W, c_half=C1, b_tile=b_tile)

    out_flat = pl.pallas_call(
        kernel,
        out_shape=jax.ShapeDtypeStruct((N, Cout, HW), jnp.float32),
        grid_spec=pltpu.PrefetchScalarGridSpec(
            num_scalar_prefetch=0,
            grid=(N // b_tile,),
            in_specs=[
                pl.BlockSpec((b_tile, C1, HW), lambda n: (n, 0, 0)),   # input_1 (f32)
                pl.BlockSpec((b_tile, C1, HW), lambda n: (n, 0, 0)),   # input_2 (f32)
                pl.BlockSpec((Cout, 9 * C1), lambda n: (0, 0)),        # 3x3 weights, x1-half
                pl.BlockSpec((Cout, 9 * C1), lambda n: (0, 0)),        # 3x3 weights, x2-half
                pl.BlockSpec((Cout, 1), lambda n: (0, 0)),             # folded BN bias
                pl.BlockSpec((Cout, Cout), lambda n: (0, 0)),          # 1x1 weights
                pl.BlockSpec((Cout, 1), lambda n: (0, 0)),             # 1x1 bias
            ],
            out_specs=pl.BlockSpec((b_tile, Cout, HW), lambda n: (n, 0, 0)),
        ),
        compiler_params=pltpu.CompilerParams(
            dimension_semantics=("parallel",),
            # Limit (not a reservation): safe on v5e/v6e (128 MiB) and within v7x's
            # 64 MiB physical VMEM per the review's <= ~48 MiB guidance.
            vmem_limit_bytes=48 * 1024 * 1024,
        ),
    )(x1f, x2f, w3a, w3b, b3, w1m, b1v)

    # (N, Cout, H*W) -> (N, Cout, H, W): free reshape, no transpose.
    return out_flat.reshape(N, Cout, H, W)


def _reference(x1, x2, w3, gamma, beta, running_mean, running_var, w1, b1, eps=1e-5):
    x = jnp.concatenate([x1, x2], axis=1)
    y = jax.lax.conv_general_dilated(
        x, w3, window_strides=(1, 1), padding="SAME",
        dimension_numbers=("NCHW", "OIHW", "NCHW"))
    scale = gamma / jnp.sqrt(running_var + eps)
    bias = beta - running_mean * scale
    y = y * scale.reshape(1, -1, 1, 1) + bias.reshape(1, -1, 1, 1)
    y = jnp.maximum(y, 0.0)
    z = jax.lax.conv_general_dilated(
        y, w1, window_strides=(1, 1), padding="SAME",
        dimension_numbers=("NCHW", "OIHW", "NCHW"))
    return z + b1.reshape(1, -1, 1, 1)


if __name__ == "__main__":
    # FeatureFusionModule_conv(num_classes=4): each input has 4 channels,
    # ConvBlock 8 -> 4 (3x3, BN, ReLU), then 1x1 conv 4 -> 4 with bias.
    num_classes, N, H, W = 4, 2, 16, 16
    C1, Cin, Cout = num_classes, 2 * num_classes, num_classes

    key = jax.random.PRNGKey(0)
    k = jax.random.split(key, 9)
    x1 = jax.random.normal(k[0], (N, C1, H, W), dtype=jnp.float32)
    x2 = jax.random.normal(k[1], (N, C1, H, W), dtype=jnp.float32)
    w3 = jax.random.normal(k[2], (Cout, Cin, 3, 3), dtype=jnp.float32) * 0.1
    gamma = 1.0 + 0.1 * jax.random.normal(k[3], (Cout,), dtype=jnp.float32)
    beta = 0.05 * jax.random.normal(k[4], (Cout,), dtype=jnp.float32)
    running_mean = 0.02 * jax.random.normal(k[5], (Cout,), dtype=jnp.float32)
    running_var = jnp.abs(1.0 + 0.1 * jax.random.normal(k[6], (Cout,), dtype=jnp.float32))
    w1 = jax.random.normal(k[7], (Cout, Cout, 1, 1), dtype=jnp.float32) * 0.2
    b1 = 0.1 * jax.random.normal(k[8], (Cout,), dtype=jnp.float32)

    out = feature_fusion_forward(x1, x2, w3, gamma, beta, running_mean, running_var,
                                 w1, b1)
    out = jax.block_until_ready(out)

    ref = _reference(x1, x2, w3, gamma, beta, running_mean, running_var, w1, b1)
    assert out.shape == (N, Cout, H, W)
    max_err = float(jnp.max(jnp.abs(out - ref)))
    # bf16 activations / weights with f32 accumulation: expect ~1e-3 abs error.
    assert max_err < 5e-2, f"max abs err {max_err}"

    print("KERNEL_OK")
</pallas_src>

<mosaic_0001>
module attributes {stable_mosaic.version = 11 : i64} {
  func.func @_fusion_kernel(%arg0: i32, %arg1: memref<2x4x256xf32, #tpu.memory_space<vmem>>, %arg2: memref<2x4x256xf32, #tpu.memory_space<vmem>>, %arg3: memref<4x36xbf16, #tpu.memory_space<vmem>>, %arg4: memref<4x36xbf16, #tpu.memory_space<vmem>>, %arg5: memref<4x1xf32, #tpu.memory_space<vmem>>, %arg6: memref<4x4xbf16, #tpu.memory_space<vmem>>, %arg7: memref<4x1xf32, #tpu.memory_space<vmem>>, %arg8: memref<2x4x256xf32, #tpu.memory_space<vmem>>) attributes {dimension_semantics = [#tpu.dimension_semantics<parallel>], iteration_bounds = array<i64: 1>, scalar_prefetch = 0 : i64, scratch_operands = 0 : i64, tpu.core_type = #tpu.core_type<tc>, window_params = [{transform_indices = @transform_0, window_bounds = array<i64: 2, 4, 256>}, {transform_indices = @transform_1, window_bounds = array<i64: 2, 4, 256>}, {pipeline_mode = #tpu.pipeline_mode<synchronous>, transform_indices = @transform_2, window_bounds = array<i64: 4, 36>}, {pipeline_mode = #tpu.pipeline_mode<synchronous>, transform_indices = @transform_3, window_bounds = array<i64: 4, 36>}, {pipeline_mode = #tpu.pipeline_mode<synchronous>, transform_indices = @transform_4, window_bounds = array<i64: 4, 1>}, {pipeline_mode = #tpu.pipeline_mode<synchronous>, transform_indices = @transform_5, window_bounds = array<i64: 4, 4>}, {pipeline_mode = #tpu.pipeline_mode<synchronous>, transform_indices = @transform_6, window_bounds = array<i64: 4, 1>}, {transform_indices = @transform_7, window_bounds = array<i64: 2, 4, 256>}]} {
    %0 = tpu.iota {dimensions = array<i32: 1>} : vector<1x256xi32>
    %c16_i32 = arith.constant 16 : i32
    %c0_i32 = arith.constant 0 : i32
    %1 = arith.cmpi eq, %c16_i32, %c0_i32 : i32
    %c1_i32 = arith.constant 1 : i32
    %2 = arith.select %1, %c1_i32, %c16_i32 : i32
    %3 = vector.broadcast %2 : i32 to vector<1x256xi32>
    %4 = arith.remsi %0, %3 : vector<1x256xi32>
    %c0_i32_0 = arith.constant 0 : i32
    %5 = vector.broadcast %c0_i32_0 : i32 to vector<1x256xi32>
    %6 = arith.cmpi ne, %4, %5 : vector<1x256xi32>
    %c0_i32_1 = arith.constant 0 : i32
    %7 = vector.broadcast %c0_i32_1 : i32 to vector<1x256xi32>
    %8 = arith.cmpi slt, %4, %7 : vector<1x256xi32>
    %c0_i32_2 = arith.constant 0 : i32
    %9 = arith.cmpi slt, %2, %c0_i32_2 : i32
    %10 = vector.broadcast %9 : i1 to vector<1x256xi1>
    %11 = vector.broadcast %10 : vector<1x256xi1> to vector<1x256xi1>
    %12 = arith.xori %8, %11 : vector<1x256xi1>
    %13 = arith.andi %12, %6 : vector<1x256xi1>
    %14 = vector.broadcast %2 : i32 to vector<1x256xi32>
    %15 = arith.addi %4, %14 : vector<1x256xi32>
    %16 = arith.select %13, %15, %4 : vector<1x256xi1>, vector<1x256xi32>
    %c0_i32_3 = arith.constant 0 : i32
    %17 = vector.broadcast %c0_i32_3 : i32 to vector<1x256xi32>
    %18 = arith.cmpi ne, %16, %17 : vector<1x256xi32>
    %19 = arith.extui %18 : vector<1x256xi1> to vector<1x256xi32>
    %20 = arith.sitofp %19 : vector<1x256xi32> to vector<1x256xf32>
    %c15_i32 = arith.constant 15 : i32
    %21 = vector.broadcast %c15_i32 : i32 to vector<1x256xi32>
    %22 = arith.cmpi ne, %16, %21 : vector<1x256xi32>
    %23 = arith.extui %22 : vector<1x256xi1> to vector<1x256xi32>
    %24 = arith.sitofp %23 : vector<1x256xi32> to vector<1x256xf32>
    %c0 = arith.constant 0 : index
    %c0_4 = arith.constant 0 : index
    %25 = vector.load %arg3[%c0, %c0_4] : memref<4x36xbf16, #tpu.memory_space<vmem>>, vector<4x36xbf16>
    %c0_5 = arith.constant 0 : index
    %c0_6 = arith.constant 0 : index
    %26 = vector.load %arg4[%c0_5, %c0_6] : memref<4x36xbf16, #tpu.memory_space<vmem>>, vector<4x36xbf16>
    %c0_7 = arith.constant 0 : index
    %c0_8 = arith.constant 0 : index
    %27 = vector.load %arg5[%c0_7, %c0_8] : memref<4x1xf32, #tpu.memory_space<vmem>>, vector<4x1xf32>
    %c0_9 = arith.constant 0 : index
    %c0_10 = arith.constant 0 : index
    %28 = vector.load %arg6[%c0_9, %c0_10] : memref<4x4xbf16, #tpu.memory_space<vmem>>, vector<4x4xbf16>
    %c0_11 = arith.constant 0 : index
    %c0_12 = arith.constant 0 : index
    %29 = vector.load %arg7[%c0_11, %c0_12] : memref<4x1xf32, #tpu.memory_space<vmem>>, vector<4x1xf32>
    %cst = arith.constant 0.000000e+00 : bf16
    %30 = vector.broadcast %cst : bf16 to vector<4x17xbf16>
    %c0_i32_13 = arith.constant 0 : i32
    %31 = arith.index_cast %c0_i32_13 : i32 to index
    %c0_14 = arith.constant 0 : index
    %c0_15 = arith.constant 0 : index
    %32 = vector.load %arg1[%31, %c0_14, %c0_15] : memref<2x4x256xf32, #tpu.memory_space<vmem>>, vector<1x4x256xf32>
    %33 = vector.shape_cast %32 : vector<1x4x256xf32> to vector<4x256xf32>
    %34 = arith.truncf %33 : vector<4x256xf32> to vector<4x256xbf16>
    %35 = arith.index_cast %c0_i32_13 : i32 to index
    %c0_16 = arith.constant 0 : index
    %c0_17 = arith.constant 0 : index
    %36 = vector.load %arg2[%35, %c0_16, %c0_17] : memref<2x4x256xf32, #tpu.memory_space<vmem>>, vector<1x4x256xf32>
    %37 = vector.shape_cast %36 : vector<1x4x256xf32> to vector<4x256xf32>
    %38 = arith.truncf %37 : vector<4x256xf32> to vector<4x256xbf16>
    %39 = tpu.concatenate %30, %34, %30 in 1 : vector<4x17xbf16>, vector<4x256xbf16>, vector<4x17xbf16> -> vector<4x290xbf16>
    %40 = tpu.concatenate %30, %38, %30 in 1 : vector<4x17xbf16>, vector<4x256xbf16>, vector<4x17xbf16> -> vector<4x290xbf16>
    %cst_18 = arith.constant 0.000000e+00 : f32
    %41 = vector.broadcast %cst_18 : f32 to vector<4x256xf32>
    %cst_19 = arith.constant 0.000000e+00 : f32
    %42 = vector.broadcast %cst_19 : f32 to vector<4x256xf32>
    %cst_20 = arith.constant 0.000000e+00 : f32
    %43 = vector.broadcast %cst_20 : f32 to vector<4x256xf32>
    %44 = vector.extract_strided_slice %39 {offsets = [0, 0], sizes = [4, 256], strides = [1, 1]} : vector<4x290xbf16> to vector<4x256xbf16>
    %45 = vector.extract_strided_slice %40 {offsets = [0, 0], sizes = [4, 256], strides = [1, 1]} : vector<4x290xbf16> to vector<4x256xbf16>
    %46 = vector.extract_strided_slice %25 {offsets = [0, 0], sizes = [4, 4], strides = [1, 1]} : vector<4x36xbf16> to vector<4x4xbf16>
    %47 = vector.extract_strided_slice %26 {offsets = [0, 0], sizes = [4, 4], strides = [1, 1]} : vector<4x36xbf16> to vector<4x4xbf16>
    %cst_21 = arith.constant dense<0.000000e+00> : vector<4x256xf32>
    %48 = tpu.matmul %46, %44, %cst_21 {dimension_numbers = #tpu.dot_dimension_numbers<[1], [0], [0], [1], [0, 0, 1, 1], [], []>} : vector<4x4xbf16>, vector<4x256xbf16>, vector<4x256xf32> -> vector<4x256xf32>
    %cst_22 = arith.constant dense<0.000000e+00> : vector<4x256xf32>
    %49 = tpu.matmul %47, %45, %cst_22 {dimension_numbers = #tpu.dot_dimension_numbers<[1], [0], [0], [1], [0, 0, 1, 1], [], []>} : vector<4x4xbf16>, vector<4x256xbf16>, vector<4x256xf32> -> vector<4x256xf32>
    %50 = arith.addf %48, %49 : vector<4x256xf32>
    %51 = arith.addf %42, %50 : vector<4x256xf32>
    %52 = vector.extract_strided_slice %39 {offsets = [0, 1], sizes = [4, 256], strides = [1, 1]} : vector<4x290xbf16> to vector<4x256xbf16>
    %53 = vector.extract_strided_slice %40 {offsets = [0, 1], sizes = [4, 256], strides = [1, 1]} : vector<4x290xbf16> to vector<4x256xbf16>
    %54 = vector.extract_strided_slice %25 {offsets = [0, 4], sizes = [4, 4], strides = [1, 1]} : vector<4x36xbf16> to vector<4x4xbf16>
    %55 = vector.extract_strided_slice %26 {offsets = [0, 4], sizes = [4, 4], strides = [1, 1]} : vector<4x36xbf16> to vector<4x4xbf16>
    %cst_23 = arith.constant dense<0.000000e+00> : vector<4x256xf32>
    %56 = tpu.matmul %54, %52, %cst_23 {dimension_numbers = #tpu.dot_dimension_numbers<[1], [0], [0], [1], [0, 0, 1, 1], [], []>} : vector<4x4xbf16>, vector<4x256xbf16>, vector<4x256xf32> -> vector<4x256xf32>
    %cst_24 = arith.constant dense<0.000000e+00> : vector<4x256xf32>
    %57 = tpu.matmul %55, %53, %cst_24 {dimension_numbers = #tpu.dot_dimension_numbers<[1], [0], [0], [1], [0, 0, 1, 1], [], []>} : vector<4x4xbf16>, vector<4x256xbf16>, vector<4x256xf32> -> vector<4x256xf32>
    %58 = arith.addf %56, %57 : vector<4x256xf32>
    %59 = arith.addf %41, %58 : vector<4x256xf32>
    %60 = vector.extract_strided_slice %39 {offsets = [0, 2], sizes = [4, 256], strides = [1, 1]} : vector<4x290xbf16> to vector<4x256xbf16>
    %61 = vector.extract_strided_slice %40 {offsets = [0, 2], sizes = [4, 256], strides = [1, 1]} : vector<4x290xbf16> to vector<4x256xbf16>
    %62 = vector.extract_strided_slice %25 {offsets = [0, 8], sizes = [4, 4], strides = [1, 1]} : vector<4x36xbf16> to vector<4x4xbf16>
    %63 = vector.extract_strided_slice %26 {offsets = [0, 8], sizes = [4, 4], strides = [1, 1]} : vector<4x36xbf16> to vector<4x4xbf16>
    %cst_25 = arith.constant dense<0.000000e+00> : vector<4x256xf32>
    %64 = tpu.matmul %62, %60, %cst_25 {dimension_numbers = #tpu.dot_dimension_numbers<[1], [0], [0], [1], [0, 0, 1, 1], [], []>} : vector<4x4xbf16>, vector<4x256xbf16>, vector<4x256xf32> -> vector<4x256xf32>
    %cst_26 = arith.constant dense<0.000000e+00> : vector<4x256xf32>
    %65 = tpu.matmul %63, %61, %cst_26 {dimension_numbers = #tpu.dot_dimension_numbers<[1], [0], [0], [1], [0, 0, 1, 1], [], []>} : vector<4x4xbf16>, vector<4x256xbf16>, vector<4x256xf32> -> vector<4x256xf32>
    %66 = arith.addf %64, %65 : vector<4x256xf32>
    %67 = arith.addf %43, %66 : vector<4x256xf32>
    %68 = vector.extract_strided_slice %39 {offsets = [0, 16], sizes = [4, 256], strides = [1, 1]} : vector<4x290xbf16> to vector<4x256xbf16>
    %69 = vector.extract_strided_slice %40 {offsets = [0, 16], sizes = [4, 256], strides = [1, 1]} : vector<4x290xbf16> to vector<4x256xbf16>
    %70 = vector.extract_strided_slice %25 {offsets = [0, 12], sizes = [4, 4], strides = [1, 1]} : vector<4x36xbf16> to vector<4x4xbf16>
    %71 = vector.extract_strided_slice %26 {offsets = [0, 12], sizes = [4, 4], strides = [1, 1]} : vector<4x36xbf16> to vector<4x4xbf16>
    %cst_27 = arith.constant dense<0.000000e+00> : vector<4x256xf32>
    %72 = tpu.matmul %70, %68, %cst_27 {dimension_numbers = #tpu.dot_dimension_numbers<[1], [0], [0], [1], [0, 0, 1, 1], [], []>} : vector<4x4xbf16>, vector<4x256xbf16>, vector<4x256xf32> -> vector<4x256xf32>
    %cst_28 = arith.constant dense<0.000000e+00> : vector<4x256xf32>
    %73 = tpu.matmul %71, %69, %cst_28 {dimension_numbers = #tpu.dot_dimension_numbers<[1], [0], [0], [1], [0, 0, 1, 1], [], []>} : vector<4x4xbf16>, vector<4x256xbf16>, vector<4x256xf32> -> vector<4x256xf32>
    %74 = arith.addf %72, %73 : vector<4x256xf32>
    %75 = arith.addf %51, %74 : vector<4x256xf32>
    %76 = vector.extract_strided_slice %39 {offsets = [0, 17], sizes = [4, 256], strides = [1, 1]} : vector<4x290xbf16> to vector<4x256xbf16>
    %77 = vector.extract_strided_slice %40 {offsets = [0, 17], sizes = [4, 256], strides = [1, 1]} : vector<4x290xbf16> to vector<4x256xbf16>
    %78 = vector.extract_strided_slice %25 {offsets = [0, 16], sizes = [4, 4], strides = [1, 1]} : vector<4x36xbf16> to vector<4x4xbf16>
    %79 = vector.extract_strided_slice %26 {offsets = [0, 16], sizes = [4, 4], strides = [1, 1]} : vector<4x36xbf16> to vector<4x4xbf16>
    %cst_29 = arith.constant dense<0.000000e+00> : vector<4x256xf32>
    %80 = tpu.matmul %78, %76, %cst_29 {dimension_numbers = #tpu.dot_dimension_numbers<[1], [0], [0], [1], [0, 0, 1, 1], [], []>} : vector<4x4xbf16>, vector<4x256xbf16>, vector<4x256xf32> -> vector<4x256xf32>
    %cst_30 = arith.constant dense<0.000000e+00> : vector<4x256xf32>
    %81 = tpu.matmul %79, %77, %cst_30 {dimension_numbers = #tpu.dot_dimension_numbers<[1], [0], [0], [1], [0, 0, 1, 1], [], []>} : vector<4x4xbf16>, vector<4x256xbf16>, vector<4x256xf32> -> vector<4x256xf32>
    %82 = arith.addf %80, %81 : vector<4x256xf32>
    %83 = arith.addf %59, %82 : vector<4x256xf32>
    %84 = vector.extract_strided_slice %39 {offsets = [0, 18], sizes = [4, 256], strides = [1, 1]} : vector<4x290xbf16> to vector<4x256xbf16>
    %85 = vector.extract_strided_slice %40 {offsets = [0, 18], sizes = [4, 256], strides = [1, 1]} : vector<4x290xbf16> to vector<4x256xbf16>
    %86 = vector.extract_strided_slice %25 {offsets = [0, 20], sizes = [4, 4], strides = [1, 1]} : vector<4x36xbf16> to vector<4x4xbf16>
    %87 = vector.extract_strided_slice %26 {offsets = [0, 20], sizes = [4, 4], strides = [1, 1]} : vector<4x36xbf16> to vector<4x4xbf16>
    %cst_31 = arith.constant dense<0.000000e+00> : vector<4x256xf32>
    %88 = tpu.matmul %86, %84, %cst_31 {dimension_numbers = #tpu.dot_dimension_numbers<[1], [0], [0], [1], [0, 0, 1, 1], [], []>} : vector<4x4xbf16>, vector<4x256xbf16>, vector<4x256xf32> -> vector<4x256xf32>
    %cst_32 = arith.constant dense<0.000000e+00> : vector<4x256xf32>
    %89 = tpu.matmul %87, %85, %cst_32 {dimension_numbers = #tpu.dot_dimension_numbers<[1], [0], [0], [1], [0, 0, 1, 1], [], []>} : vector<4x4xbf16>, vector<4x256xbf16>, vector<4x256xf32> -> vector<4x256xf32>
    %90 = arith.addf %88, %89 : vector<4x256xf32>
    %91 = arith.addf %67, %90 : vector<4x256xf32>
    %92 = vector.extract_strided_slice %39 {offsets = [0, 32], sizes = [4, 256], strides = [1, 1]} : vector<4x290xbf16> to vector<4x256xbf16>
    %93 = vector.extract_strided_slice %40 {offsets = [0, 32], sizes = [4, 256], strides = [1, 1]} : vector<4x290xbf16> to vector<4x256xbf16>
    %94 = vector.extract_strided_slice %25 {offsets = [0, 24], sizes = [4, 4], strides = [1, 1]} : vector<4x36xbf16> to vector<4x4xbf16>
    %95 = vector.extract_strided_slice %26 {offsets = [0, 24], sizes = [4, 4], strides = [1, 1]} : vector<4x36xbf16> to vector<4x4xbf16>
    %cst_33 = arith.constant dense<0.000000e+00> : vector<4x256xf32>
    %96 = tpu.matmul %94, %92, %cst_33 {dimension_numbers = #tpu.dot_dimension_numbers<[1], [0], [0], [1], [0, 0, 1, 1], [], []>} : vector<4x4xbf16>, vector<4x256xbf16>, vector<4x256xf32> -> vector<4x256xf32>
    %cst_34 = arith.constant dense<0.000000e+00> : vector<4x256xf32>
    %97 = tpu.matmul %95, %93, %cst_34 {dimension_numbers = #tpu.dot_dimension_numbers<[1], [0], [0], [1], [0, 0, 1, 1], [], []>} : vector<4x4xbf16>, vector<4x256xbf16>, vector<4x256xf32> -> vector<4x256xf32>
    %98 = arith.addf %96, %97 : vector<4x256xf32>
    %99 = arith.addf %75, %98 : vector<4x256xf32>
    %100 = vector.extract_strided_slice %39 {offsets = [0, 33], sizes = [4, 256], strides = [1, 1]} : vector<4x290xbf16> to vector<4x256xbf16>
    %101 = vector.extract_strided_slice %40 {offsets = [0, 33], sizes = [4, 256], strides = [1, 1]} : vector<4x290xbf16> to vector<4x256xbf16>
    %102 = vector.extract_strided_slice %25 {offsets = [0, 28], sizes = [4, 4], strides = [1, 1]} : vector<4x36xbf16> to vector<4x4xbf16>
    %103 = vector.extract_strided_slice %26 {offsets = [0, 28], sizes = [4, 4], strides = [1, 1]} : vector<4x36xbf16> to vector<4x4xbf16>
    %cst_35 = arith.constant dense<0.000000e+00> : vector<4x256xf32>
    %104 = tpu.matmul %102, %100, %cst_35 {dimension_numbers = #tpu.dot_dimension_numbers<[1], [0], [0], [1], [0, 0, 1, 1], [], []>} : vector<4x4xbf16>, vector<4x256xbf16>, vector<4x256xf32> -> vector<4x256xf32>
    %cst_36 = arith.constant dense<0.000000e+00> : vector<4x256xf32>
    %105 = tpu.matmul %103, %101, %cst_36 {dimension_numbers = #tpu.dot_dimension_numbers<[1], [0], [0], [1], [0, 0, 1, 1], [], []>} : vector<4x4xbf16>, vector<4x256xbf16>, vector<4x256xf32> -> vector<4x256xf32>
    %106 = arith.addf %104, %105 : vector<4x256xf32>
    %107 = arith.addf %83, %106 : vector<4x256xf32>
    %108 = vector.extract_strided_slice %39 {offsets = [0, 34], sizes = [4, 256], strides = [1, 1]} : vector<4x290xbf16> to vector<4x256xbf16>
    %109 = vector.extract_strided_slice %40 {offsets = [0, 34], sizes = [4, 256], strides = [1, 1]} : vector<4x290xbf16> to vector<4x256xbf16>
    %110 = vector.extract_strided_slice %25 {offsets = [0, 32], sizes = [4, 4], strides = [1, 1]} : vector<4x36xbf16> to vector<4x4xbf16>
    %111 = vector.extract_strided_slice %26 {offsets = [0, 32], sizes = [4, 4], strides = [1, 1]} : vector<4x36xbf16> to vector<4x4xbf16>
    %cst_37 = arith.constant dense<0.000000e+00> : vector<4x256xf32>
    %112 = tpu.matmul %110, %108, %cst_37 {dimension_numbers = #tpu.dot_dimension_numbers<[1], [0], [0], [1], [0, 0, 1, 1], [], []>} : vector<4x4xbf16>, vector<4x256xbf16>, vector<4x256xf32> -> vector<4x256xf32>
    %cst_38 = arith.constant dense<0.000000e+00> : vector<4x256xf32>
    %113 = tpu.matmul %111, %109, %cst_38 {dimension_numbers = #tpu.dot_dimension_numbers<[1], [0], [0], [1], [0, 0, 1, 1], [], []>} : vector<4x4xbf16>, vector<4x256xbf16>, vector<4x256xf32> -> vector<4x256xf32>
    %114 = arith.addf %112, %113 : vector<4x256xf32>
    %115 = arith.addf %91, %114 : vector<4x256xf32>
    %116 = vector.broadcast %20 : vector<1x256xf32> to vector<4x256xf32>
    %117 = arith.mulf %99, %116 : vector<4x256xf32>
    %118 = arith.addf %107, %117 : vector<4x256xf32>
    %119 = vector.broadcast %24 : vector<1x256xf32> to vector<4x256xf32>
    %120 = arith.mulf %115, %119 : vector<4x256xf32>
    %121 = arith.addf %118, %120 : vector<4x256xf32>
    %122 = vector.broadcast %27 : vector<4x1xf32> to vector<4x256xf32>
    %123 = arith.addf %121, %122 : vector<4x256xf32>
    %cst_39 = arith.constant 0.000000e+00 : f32
    %124 = vector.broadcast %cst_39 : f32 to vector<4x256xf32>
    %125 = arith.maximumf %123, %124 : vector<4x256xf32>
    %126 = arith.truncf %125 : vector<4x256xf32> to vector<4x256xbf16>
    %cst_40 = arith.constant dense<0.000000e+00> : vector<4x256xf32>
    %127 = tpu.matmul %28, %126, %cst_40 {dimension_numbers = #tpu.dot_dimension_numbers<[1], [0], [0], [1], [0, 0, 1, 1], [], []>} : vector<4x4xbf16>, vector<4x256xbf16>, vector<4x256xf32> -> vector<4x256xf32>
    %128 = vector.broadcast %29 : vector<4x1xf32> to vector<4x256xf32>
    %129 = arith.addf %127, %128 : vector<4x256xf32>
    %130 = arith.index_cast %c0_i32_13 : i32 to index
    %c0_41 = arith.constant 0 : index
    %c0_42 = arith.constant 0 : index
    %131 = vector.load %arg8[%130, %c0_41, %c0_42] : memref<2x4x256xf32, #tpu.memory_space<vmem>>, vector<1x4x256xf32>
    %132 = vector.shape_cast %131 : vector<1x4x256xf32> to vector<4x256xf32>
    %133 = vector.shape_cast %129 : vector<4x256xf32> to vector<1x4x256xf32>
    tpu.vector_store %arg8[%130, %c0_41, %c0_42], %133 {strides = array<i32>} : memref<2x4x256xf32, #tpu.memory_space<vmem>>, vector<1x4x256xf32>,
    %c1_i32_43 = arith.constant 1 : i32
    %134 = arith.index_cast %c1_i32_43 : i32 to index
    %c0_44 = arith.constant 0 : index
    %c0_45 = arith.constant 0 : index
    %135 = vector.load %arg1[%134, %c0_44, %c0_45] : memref<2x4x256xf32, #tpu.memory_space<vmem>>, vector<1x4x256xf32>
    %136 = vector.shape_cast %135 : vector<1x4x256xf32> to vector<4x256xf32>
    %137 = arith.truncf %136 : vector<4x256xf32> to vector<4x256xbf16>
    %138 = arith.index_cast %c1_i32_43 : i32 to index
    %c0_46 = arith.constant 0 : index
    %c0_47 = arith.constant 0 : index
    %139 = vector.load %arg2[%138, %c0_46, %c0_47] : memref<2x4x256xf32, #tpu.memory_space<vmem>>, vector<1x4x256xf32>
    %140 = vector.shape_cast %139 : vector<1x4x256xf32> to vector<4x256xf32>
    %141 = arith.truncf %140 : vector<4x256xf32> to vector<4x256xbf16>
    %142 = tpu.concatenate %30, %137, %30 in 1 : vector<4x17xbf16>, vector<4x256xbf16>, vector<4x17xbf16> -> vector<4x290xbf16>
    %143 = tpu.concatenate %30, %141, %30 in 1 : vector<4x17xbf16>, vector<4x256xbf16>, vector<4x17xbf16> -> vector<4x290xbf16>
    %cst_48 = arith.constant 0.000000e+00 : f32
    %144 = vector.broadcast %cst_48 : f32 to vector<4x256xf32>
    %cst_49 = arith.constant 0.000000e+00 : f32
    %145 = vector.broadcast %cst_49 : f32 to vector<4x256xf32>
    %cst_50 = arith.constant 0.000000e+00 : f32
    %146 = vector.broadcast %cst_50 : f32 to vector<4x256xf32>
    %147 = vector.extract_strided_slice %142 {offsets = [0, 0], sizes = [4, 256], strides = [1, 1]} : vector<4x290xbf16> to vector<4x256xbf16>
    %148 = vector.extract_strided_slice %143 {offsets = [0, 0], sizes = [4, 256], strides = [1, 1]} : vector<4x290xbf16> to vector<4x256xbf16>
    %149 = vector.extract_strided_slice %25 {offsets = [0, 0], sizes = [4, 4], strides = [1, 1]} : vector<4x36xbf16> to vector<4x4xbf16>
    %150 = vector.extract_strided_slice %26 {offsets = [0, 0], sizes = [4, 4], strides = [1, 1]} : vector<4x36xbf16> to vector<4x4xbf16>
    %cst_51 = arith.constant dense<0.000000e+00> : vector<4x256xf32>
    %151 = tpu.matmul %149, %147, %cst_51 {dimension_numbers = #tpu.dot_dimension_numbers<[1], [0], [0], [1], [0, 0, 1, 1], [], []>} : vector<4x4xbf16>, vector<4x256xbf16>, vector<4x256xf32> -> vector<4x256xf32>
    %cst_52 = arith.constant dense<0.000000e+00> : vector<4x256xf32>
    %152 = tpu.matmul %150, %148, %cst_52 {dimension_numbers = #tpu.dot_dimension_numbers<[1], [0], [0], [1], [0, 0, 1, 1], [], []>} : vector<4x4xbf16>, vector<4x256xbf16>, vector<4x256xf32> -> vector<4x256xf32>
    %153 = arith.addf %151, %152 : vector<4x256xf32>
    %154 = arith.addf %145, %153 : vector<4x256xf32>
    %155 = vector.extract_strided_slice %142 {offsets = [0, 1], sizes = [4, 256], strides = [1, 1]} : vector<4x290xbf16> to vector<4x256xbf16>
    %156 = vector.extract_strided_slice %143 {offsets = [0, 1], sizes = [4, 256], strides = [1, 1]} : vector<4x290xbf16> to vector<4x256xbf16>
    %157 = vector.extract_strided_slice %25 {offsets = [0, 4], sizes = [4, 4], strides = [1, 1]} : vector<4x36xbf16> to vector<4x4xbf16>
    %158 = vector.extract_strided_slice %26 {offsets = [0, 4], sizes = [4, 4], strides = [1, 1]} : vector<4x36xbf16> to vector<4x4xbf16>
    %cst_53 = arith.constant dense<0.000000e+00> : vector<4x256xf32>
    %159 = tpu.matmul %157, %155, %cst_53 {dimension_numbers = #tpu.dot_dimension_numbers<[1], [0], [0], [1], [0, 0, 1, 1], [], []>} : vector<4x4xbf16>, vector<4x256xbf16>, vector<4x256xf32> -> vector<4x256xf32>
    %cst_54 = arith.constant dense<0.000000e+00> : vector<4x256xf32>
    %160 = tpu.matmul %158, %156, %cst_54 {dimension_numbers = #tpu.dot_dimension_numbers<[1], [0], [0], [1], [0, 0, 1, 1], [], []>} : vector<4x4xbf16>, vector<4x256xbf16>, vector<4x256xf32> -> vector<4x256xf32>
    %161 = arith.addf %159, %160 : vector<4x256xf32>
    %162 = arith.addf %144, %161 : vector<4x256xf32>
    %163 = vector.extract_strided_slice %142 {offsets = [0, 2], sizes = [4, 256], strides = [1, 1]} : vector<4x290xbf16> to vector<4x256xbf16>
    %164 = vector.extract_strided_slice %143 {offsets = [0, 2], sizes = [4, 256], strides = [1, 1]} : vector<4x290xbf16> to vector<4x256xbf16>
    %165 = vector.extract_strided_slice %25 {offsets = [0, 8], sizes = [4, 4], strides = [1, 1]} : vector<4x36xbf16> to vector<4x4xbf16>
    %166 = vector.extract_strided_slice %26 {offsets = [0, 8], sizes = [4, 4], strides = [1, 1]} : vector<4x36xbf16> to vector<4x4xbf16>
    %cst_55 = arith.constant dense<0.000000e+00> : vector<4x256xf32>
    %167 = tpu.matmul %165, %163, %cst_55 {dimension_numbers = #tpu.dot_dimension_numbers<[1], [0], [0], [1], [0, 0, 1, 1], [], []>} : vector<4x4xbf16>, vector<4x256xbf16>, vector<4x256xf32> -> vector<4x256xf32>
    %cst_56 = arith.constant dense<0.000000e+00> : vector<4x256xf32>
    %168 = tpu.matmul %166, %164, %cst_56 {dimension_numbers = #tpu.dot_dimension_numbers<[1], [0], [0], [1], [0, 0, 1, 1], [], []>} : vector<4x4xbf16>, vector<4x256xbf16>, vector<4x256xf32> -> vector<4x256xf32>
    %169 = arith.addf %167, %168 : vector<4x256xf32>
    %170 = arith.addf %146, %169 : vector<4x256xf32>
    %171 = vector.extract_strided_slice %142 {offsets = [0, 16], sizes = [4, 256], strides = [1, 1]} : vector<4x290xbf16> to vector<4x256xbf16>
    %172 = vector.extract_strided_slice %143 {offsets = [0, 16], sizes = [4, 256], strides = [1, 1]} : vector<4x290xbf16> to vector<4x256xbf16>
    %173 = vector.extract_strided_slice %25 {offsets = [0, 12], sizes = [4, 4], strides = [1, 1]} : vector<4x36xbf16> to vector<4x4xbf16>
    %174 = vector.extract_strided_slice %26 {offsets = [0, 12], sizes = [4, 4], strides = [1, 1]} : vector<4x36xbf16> to vector<4x4xbf16>
    %cst_57 = arith.constant dense<0.000000e+00> : vector<4x256xf32>
    %175 = tpu.matmul %173, %171, %cst_57 {dimension_numbers = #tpu.dot_dimension_numbers<[1], [0], [0], [1], [0, 0, 1, 1], [], []>} : vector<4x4xbf16>, vector<4x256xbf16>, vector<4x256xf32> -> vector<4x256xf32>
    %cst_58 = arith.constant dense<0.000000e+00> : vector<4x256xf32>
    %176 = tpu.matmul %174, %172, %cst_58 {dimension_numbers = #tpu.dot_dimension_numbers<[1], [0], [0], [1], [0, 0, 1, 1], [], []>} : vector<4x4xbf16>, vector<4x256xbf16>, vector<4x256xf32> -> vector<4x256xf32>
    %177 = arith.addf %175, %176 : vector<4x256xf32>
    %178 = arith.addf %154, %177 : vector<4x256xf32>
    %179 = vector.extract_strided_slice %142 {offsets = [0, 17], sizes = [4, 256], strides = [1, 1]} : vector<4x290xbf16> to vector<4x256xbf16>
    %180 = vector.extract_strided_slice %143 {offsets = [0, 17], sizes = [4, 256], strides = [1, 1]} : vector<4x290xbf16> to vector<4x256xbf16>
    %181 = vector.extract_strided_slice %25 {offsets = [0, 16], sizes = [4, 4], strides = [1, 1]} : vector<4x36xbf16> to vector<4x4xbf16>
    %182 = vector.extract_strided_slice %26 {offsets = [0, 16], sizes = [4, 4], strides = [1, 1]} : vector<4x36xbf16> to vector<4x4xbf16>
    %cst_59 = arith.constant dense<0.000000e+00> : vector<4x256xf32>
    %183 = tpu.matmul %181, %179, %cst_59 {dimension_numbers = #tpu.dot_dimension_numbers<[1], [0], [0], [1], [0, 0, 1, 1], [], []>} : vector<4x4xbf16>, vector<4x256xbf16>, vector<4x256xf32> -> vector<4x256xf32>
    %cst_60 = arith.constant dense<0.000000e+00> : vector<4x256xf32>
    %184 = tpu.matmul %182, %180, %cst_60 {dimension_numbers = #tpu.dot_dimension_numbers<[1], [0], [0], [1], [0, 0, 1, 1], [], []>} : vector<4x4xbf16>, vector<4x256xbf16>, vector<4x256xf32> -> vector<4x256xf32>
    %185 = arith.addf %183, %184 : vector<4x256xf32>
    %186 = arith.addf %162, %185 : vector<4x256xf32>
    %187 = vector.extract_strided_slice %142 {offsets = [0, 18], sizes = [4, 256], strides = [1, 1]} : vector<4x290xbf16> to vector<4x256xbf16>
    %188 = vector.extract_strided_slice %143 {offsets = [0, 18], sizes = [4, 256], strides = [1, 1]} : vector<4x290xbf16> to vector<4x256xbf16>
    %189 = vector.extract_strided_slice %25 {offsets = [0, 20], sizes = [4, 4], strides = [1, 1]} : vector<4x36xbf16> to vector<4x4xbf16>
    %190 = vector.extract_strided_slice %26 {offsets = [0, 20], sizes = [4, 4], strides = [1, 1]} : vector<4x36xbf16> to vector<4x4xbf16>
    %cst_61 = arith.constant dense<0.000000e+00> : vector<4x256xf32>
    %191 = tpu.matmul %189, %187, %cst_61 {dimension_numbers = #tpu.dot_dimension_numbers<[1], [0], [0], [1], [0, 0, 1, 1], [], []>} : vector<4x4xbf16>, vector<4x256xbf16>, vector<4x256xf32> -> vector<4x256xf32>
    %cst_62 = arith.constant dense<0.000000e+00> : vector<4x256xf32>
    %192 = tpu.matmul %190, %188, %cst_62 {dimension_numbers = #tpu.dot_dimension_numbers<[1], [0], [0], [1], [0, 0, 1, 1], [], []>} : vector<4x4xbf16>, vector<4x256xbf16>, vector<4x256xf32> -> vector<4x256xf32>
    %193 = arith.addf %191, %192 : vector<4x256xf32>
    %194 = arith.addf %170, %193 : vector<4x256xf32>
    %195 = vector.extract_strided_slice %142 {offsets = [0, 32], sizes = [4, 256], strides = [1, 1]} : vector<4x290xbf16> to vector<4x256xbf16>
    %196 = vector.extract_strided_slice %143 {offsets = [0, 32], sizes = [4, 256], strides = [1, 1]} : vector<4x290xbf16> to vector<4x256xbf16>
    %197 = vector.extract_strided_slice %25 {offsets = [0, 24], sizes = [4, 4], strides = [1, 1]} : vector<4x36xbf16> to vector<4x4xbf16>
    %198 = vector.extract_strided_slice %26 {offsets = [0, 24], sizes = [4, 4], strides = [1, 1]} : vector<4x36xbf16> to vector<4x4xbf16>
    %cst_63 = arith.constant dense<0.000000e+00> : vector<4x256xf32>
    %199 = tpu.matmul %197, %195, %cst_63 {dimension_numbers = #tpu.dot_dimension_numbers<[1], [0], [0], [1], [0, 0, 1, 1], [], []>} : vector<4x4xbf16>, vector<4x256xbf16>, vector<4x256xf32> -> vector<4x256xf32>
    %cst_64 = arith.constant dense<0.000000e+00> : vector<4x256xf32>
    %200 = tpu.matmul %198, %196, %cst_64 {dimension_numbers = #tpu.dot_dimension_numbers<[1], [0], [0], [1], [0, 0, 1, 1], [], []>} : vector<4x4xbf16>, vector<4x256xbf16>, vector<4x256xf32> -> vector<4x256xf32>
    %201 = arith.addf %199, %200 : vector<4x256xf32>
    %202 = arith.addf %178, %201 : vector<4x256xf32>
    %203 = vector.extract_strided_slice %142 {offsets = [0, 33], sizes = [4, 256], strides = [1, 1]} : vector<4x290xbf16> to vector<4x256xbf16>
    %204 = vector.extract_strided_slice %143 {offsets = [0, 33], sizes = [4, 256], strides = [1, 1]} : vector<4x290xbf16> to vector<4x256xbf16>
    %205 = vector.extract_strided_slice %25 {offsets = [0, 28], sizes = [4, 4], strides = [1, 1]} : vector<4x36xbf16> to vector<4x4xbf16>
    %206 = vector.extract_strided_slice %26 {offsets = [0, 28], sizes = [4, 4], strides = [1, 1]} : vector<4x36xbf16> to vector<4x4xbf16>
    %cst_65 = arith.constant dense<0.000000e+00> : vector<4x256xf32>
    %207 = tpu.matmul %205, %203, %cst_65 {dimension_numbers = #tpu.dot_dimension_numbers<[1], [0], [0], [1], [0, 0, 1, 1], [], []>} : vector<4x4xbf16>, vector<4x256xbf16>, vector<4x256xf32> -> vector<4x256xf32>
    %cst_66 = arith.constant dense<0.000000e+00> : vector<4x256xf32>
    %208 = tpu.matmul %206, %204, %cst_66 {dimension_numbers = #tpu.dot_dimension_numbers<[1], [0], [0], [1], [0, 0, 1, 1], [], []>} : vector<4x4xbf16>, vector<4x256xbf16>, vector<4x256xf32> -> vector<4x256xf32>
    %209 = arith.addf %207, %208 : vector<4x256xf32>
    %210 = arith.addf %186, %209 : vector<4x256xf32>
    %211 = vector.extract_strided_slice %142 {offsets = [0, 34], sizes = [4, 256], strides = [1, 1]} : vector<4x290xbf16> to vector<4x256xbf16>
    %212 = vector.extract_strided_slice %143 {offsets = [0, 34], sizes = [4, 256], strides = [1, 1]} : vector<4x290xbf16> to vector<4x256xbf16>
    %213 = vector.extract_strided_slice %25 {offsets = [0, 32], sizes = [4, 4], strides = [1, 1]} : vector<4x36xbf16> to vector<4x4xbf16>
    %214 = vector.extract_strided_slice %26 {offsets = [0, 32], sizes = [4, 4], strides = [1, 1]} : vector<4x36xbf16> to vector<4x4xbf16>
    %cst_67 = arith.constant dense<0.000000e+00> : vector<4x256xf32>
    %215 = tpu.matmul %213, %211, %cst_67 {dimension_numbers = #tpu.dot_dimension_numbers<[1], [0], [0], [1], [0, 0, 1, 1], [], []>} : vector<4x4xbf16>, vector<4x256xbf16>, vector<4x256xf32> -> vector<4x256xf32>
    %cst_68 = arith.constant dense<0.000000e+00> : vector<4x256xf32>
    %216 = tpu.matmul %214, %212, %cst_68 {dimension_numbers = #tpu.dot_dimension_numbers<[1], [0], [0], [1], [0, 0, 1, 1], [], []>} : vector<4x4xbf16>, vector<4x256xbf16>, vector<4x256xf32> -> vector<4x256xf32>
    %217 = arith.addf %215, %216 : vector<4x256xf32>
    %218 = arith.addf %194, %217 : vector<4x256xf32>
    %219 = vector.broadcast %20 : vector<1x256xf32> to vector<4x256xf32>
    %220 = arith.mulf %202, %219 : vector<4x256xf32>
    %221 = arith.addf %210, %220 : vector<4x256xf32>
    %222 = vector.broadcast %24 : vector<1x256xf32> to vector<4x256xf32>
    %223 = arith.mulf %218, %222 : vector<4x256xf32>
    %224 = arith.addf %221, %223 : vector<4x256xf32>
    %225 = vector.broadcast %27 : vector<4x1xf32> to vector<4x256xf32>
    %226 = arith.addf %224, %225 : vector<4x256xf32>
    %cst_69 = arith.constant 0.000000e+00 : f32
    %227 = vector.broadcast %cst_69 : f32 to vector<4x256xf32>
    %228 = arith.maximumf %226, %227 : vector<4x256xf32>
    %229 = arith.truncf %228 : vector<4x256xf32> to vector<4x256xbf16>
    %cst_70 = arith.constant dense<0.000000e+00> : vector<4x256xf32>
    %230 = tpu.matmul %28, %229, %cst_70 {dimension_numbers = #tpu.dot_dimension_numbers<[1], [0], [0], [1], [0, 0, 1, 1], [], []>} : vector<4x4xbf16>, vector<4x256xbf16>, vector<4x256xf32> -> vector<4x256xf32>
    %231 = vector.broadcast %29 : vector<4x1xf32> to vector<4x256xf32>
    %232 = arith.addf %230, %231 : vector<4x256xf32>
    %233 = arith.index_cast %c1_i32_43 : i32 to index
    %c0_71 = arith.constant 0 : index
    %c0_72 = arith.constant 0 : index
    %234 = vector.load %arg8[%233, %c0_71, %c0_72] : memref<2x4x256xf32, #tpu.memory_space<vmem>>, vector<1x4x256xf32>
    %235 = vector.shape_cast %234 : vector<1x4x256xf32> to vector<4x256xf32>
    %236 = vector.shape_cast %232 : vector<4x256xf32> to vector<1x4x256xf32>
    tpu.vector_store %arg8[%233, %c0_71, %c0_72], %236 {strides = array<i32>} : memref<2x4x256xf32, #tpu.memory_space<vmem>>, vector<1x4x256xf32>,
    %c2_i32 = arith.constant 2 : i32
    return
  }
  func.func @transform_0(%arg0: i32) -> (i32, i32, i32) {
    %c0_i32 = arith.constant 0 : i32
    %c0_i32_0 = arith.constant 0 : i32
    %c0_i32_1 = arith.constant 0 : i32
    return %arg0, %c0_i32, %c0_i32_0 : i32, i32, i32
  }
  func.func @transform_1(%arg0: i32) -> (i32, i32, i32) {
    %c0_i32 = arith.constant 0 : i32
    %c0_i32_0 = arith.constant 0 : i32
    %c0_i32_1 = arith.constant 0 : i32
    return %arg0, %c0_i32, %c0_i32_0 : i32, i32, i32
  }
  func.func @transform_2(%arg0: i32) -> (i32, i32) {
    %c0_i32 = arith.constant 0 : i32
    %c0_i32_0 = arith.constant 0 : i32
    %c0_i32_1 = arith.constant 0 : i32
    return %c0_i32, %c0_i32_0 : i32, i32
  }
  func.func @transform_3(%arg0: i32) -> (i32, i32) {
    %c0_i32 = arith.constant 0 : i32
    %c0_i32_0 = arith.constant 0 : i32
    %c0_i32_1 = arith.constant 0 : i32
    return %c0_i32, %c0_i32_0 : i32, i32
  }
  func.func @transform_4(%arg0: i32) -> (i32, i32) {
    %c0_i32 = arith.constant 0 : i32
    %c0_i32_0 = arith.constant 0 : i32
    %c0_i32_1 = arith.constant 0 : i32
    return %c0_i32, %c0_i32_0 : i32, i32
  }
  func.func @transform_5(%arg0: i32) -> (i32, i32) {
    %c0_i32 = arith.constant 0 : i32
    %c0_i32_0 = arith.constant 0 : i32
    %c0_i32_1 = arith.constant 0 : i32
    return %c0_i32, %c0_i32_0 : i32, i32
  }
  func.func @transform_6(%arg0: i32) -> (i32, i32) {
    %c0_i32 = arith.constant 0 : i32
    %c0_i32_0 = arith.constant 0 : i32
    %c0_i32_1 = arith.constant 0 : i32
    return %c0_i32, %c0_i32_0 : i32, i32
  }
  func.func @transform_7(%arg0: i32) -> (i32, i32, i32) {
    %c0_i32 = arith.constant 0 : i32
    %c0_i32_0 = arith.constant 0 : i32
    %c0_i32_1 = arith.constant 0 : i32
    return %arg0, %c0_i32, %c0_i32_0 : i32, i32, i32
  }
}

</mosaic_0001>

<bundles_post_ra>
// kernel: tpu_custom_call.1
= control target key start
LH: loop header
LB: loop body
LE: loop exit
PB: predicated region body
PF: predicated region fallthrough
CT: control target
= control target key end

     0   :  { %12 = vsyncpa [#allocation3], 0  ;;  %s3416_s0 = inlined_call_operand.hbm [shape: f32[2,4,256], index: 0, kind: input, shape index: {}]   ;;  %s3417_s1 = inlined_call_operand.hbm [shape: f32[2,4,256], index: 1, kind: input, shape index: {}]   ;;  %s3418_s2 = inlined_call_operand.vmem [shape: bf16[4,36], index: 2, kind: input, shape index: {}]   ;;  %s3419_s3 = inlined_call_operand.vmem [shape: bf16[4,36], index: 3, kind: input, shape index: {}]   ;;  %s3420_s4 = inlined_call_operand.vmem [shape: f32[4,1], index: 4, kind: input, shape index: {}]   ;;  %s3421_s5 = inlined_call_operand.vmem [shape: bf16[4,4], index: 5, kind: input, shape index: {}]   ;;  %s3422_s6 = inlined_call_operand.vmem [shape: f32[4,1], index: 6, kind: input, shape index: {}]   ;;  %s3423_s7 = inlined_call_operand.hbm [shape: f32[2,4,256], index: 7, kind: output, shape index: {}]  }
   0x1   :  { %13 = vsyncpa [#allocation6], 0 }
   0x2   :  { %14 = vsyncpa [#allocation4], 0  ;;  %s2612_s24 = smov [#allocation2]  }
   0x3   :  { %s20_s25 = sshll.u32 %s2612_s24, 4  ;;  %s21_s25 = int_to_ptr.vmem [resolvable:$true] %s20_s25 }
   0x4   :  { %s2554_s26 = scalar_lea.vmem %s21_s25, 256  ;;  %p2559_p1 = scmp.lt.s32.totalorder %s21_s25, %s21_s25 }
   0x5   :  { %p2555_p0 = scmp.ne.s32.totalorder %s21_s25, %s2554_s26  ;;  %p2560_p2 = scmp.lt.s32.totalorder %s2554_s26, %s2554_s26 }
   0x7   :  { %p2561_p3 = por %p2560_p2, %p2559_p1 }
   0x9   :  { %p2562_p4 = pnand %p2561_p3, %p2555_p0 }
   0xb   :  { %2565 = shalt.err (!%p2562_p4)
}
   0xc   :  { %s2613_s27 = smov 128   ;;  %s2614_s28 = smov 8  }
   0xd   :  { %26 = dma.hbm_to_vmem [thread:$0]  %s3416_s0, 256, %s21_s25, [#allocation3], %s2613_s27, %s2613_s27, %s2614_s28  }
   0xe   :  { %s2615_s8 = smov [#allocation5]  }
   0xf   :  { %s32_s9 = sshll.u32 %s2615_s8, 4  ;;  %s33_s9 = int_to_ptr.vmem [resolvable:$true] %s32_s9 }
  0x10   :  { %s2574_s10 = scalar_lea.vmem %s33_s9, 256  ;;  %p2579_p6 = scmp.lt.s32.totalorder %s33_s9, %s33_s9 }
  0x11   :  { %p2575_p5 = scmp.ne.s32.totalorder %s33_s9, %s2574_s10  ;;  %p2580_p7 = scmp.lt.s32.totalorder %s2574_s10, %s2574_s10 }
  0x13   :  { %p2581_p8 = por %p2580_p7, %p2579_p6 }
  0x15   :  { %p2582_p9 = pnand %p2581_p8, %p2575_p5 }
  0x17   :  { %2585 = shalt.err (!%p2582_p9)
}
  0x18   :  { %38 = dma.hbm_to_vmem [thread:$0]  %s3417_s1, 256, %s33_s9, [#allocation6], %s2613_s27, %s2613_s27, %s2614_s28  }
  0x19   :  { %2606 = dma.done.wait [#allocation3], 256  }
  0x1a   :  { %2607 = vsyncadd [#allocation3], 4294967040 }
  0x1b   :  { %2608 = dma.done.wait [#allocation6], 256  }
  0x1c   :  { %2609 = vsyncadd [#allocation6], 4294967040  ;;  %v56_v0 = vlaneseq  ;;  %v2616_v1 = vmov 1983009808   ;;  %v106_v6 = vld [vmem:[#allocation5] sm:$0xff]  ;;  %v100_v7 = vld [vmem:[#allocation2] sm:$0xff] }
  0x1d   :  { %v241_v2 = vunpack.c.l.s4 %v2616_v1  ;;  %v2691_v8 = vld [vmem:[%s3419_s3] sm:$0x3]  ;;  %v110_v9 = vpack.c.bf16 %v106_v6, %v106_v6  ;;  %v104_v10 = vpack.c.bf16 %v100_v7, %v100_v7  ;;  %s2617_s15 = smov 17   ;;  %v108_v14 = vcombine.high %v106_v6, %v106_v6  ;;  %s2618_s3 = smov 124   ;;  %v1323_v39 = vld [vmem:[#allocation2 + $0x8] sm:$0xff]  ;;  %v1330_v41 = vld [vmem:[#allocation5 + $0x8] sm:$0xff] }
  0x1e   :  { %v244_v3 = vshrl.u32 %v56_v0, 7  ;;  %v2696_v11 = vld [vmem:[%s3418_s2] sm:$0x3]  ;;  %v102_v15 = vcombine.high %v100_v7, %v100_v7  ;;  %s2619_s16 = smov 120   ;;  %s2620_s17 = smov 116   ;;  %vm118_vm0 = vcmask 138240   ;;  %v1325_v40 = vcombine.high %v1323_v39, %v1323_v39 }
  0x1f   :  { %v242_v4 = vunpack.c.0.s8 %v241_v2  ;;  %128 = vrot.lane.b32.xlu1 %v110_v9, %s2617_s15  ;;  %114 = vrot.lane.b32.xlu0 %v104_v10, %s2617_s15  ;;  %v111_v17 = vpack.c.bf16 %v108_v14, %v108_v14  ;;  %s2621_s18 = smov 112   ;;  %s2622_s19 = smov 108   ;;  %vm141_vm1 = vcmask 1041408   ;;  %vm137_vm2 = vcmask 31744   ;;  %v97_v51 = vld [vmem:[%s3420_s4] sm:$0xf] }
  0x20   :  { %v105_v16 = vpack.c.bf16 %v102_v15, %v102_v15  ;;  %s2623_s20 = smov 104   ;;  %s2624_s21 = smov 100   ;;  %v3424_v32 = vmov 0   ;;  %v1327_v42 = vpack.c.bf16 %v1323_v39, %v1323_v39  ;;  %v1328_v45 = vpack.c.bf16 %v1325_v40, %v1325_v40 }
  0x21   :  { %v245_v5 = vsub.s32 %v242_v4, %v244_v3  ;;  %s2625_s22 = smov 127   ;;  %s2626_s23 = smov 126   ;;  %179 = vmatprep.mubr.bf16.mxu0 %v3424_v32  ;;  %228 = vmatprep.mubr.bf16.mxu1 %v3424_v32  ;;  %v1332_v46 = vcombine.high %v1330_v41, %v1330_v41  ;;  %v1334_v47 = vpack.c.bf16 %v1330_v41, %v1330_v41  ;;  %vm257_vm3 = vcmask 1039360  }
  0x22   :  { %s2627_s24 = smov 111   ;;  %s2629_s25 = smov 110   ;;  %2540 = vset.pattern.permute.xlu0 %v3424_v32  ;;  %vm390_vm4 = vcmask 1031168   ;;  %vm513_vm5 = vcmask 916480   ;;  %vm636_vm6 = vcmask 908288   ;;  %vm759_vm7 = vcmask 900096  }
  0x23   :  { %v2701_v12 = vrot.slane %v2691_v8, %v245_v5  ;;  %v2704_v13 = vrot.slane %v2696_v11, %v245_v5  ;;  %s2630_s26 = smov 96   ;;  %s2631_s29 = smov 95   ;;  %v1335_v48 = vpack.c.bf16 %v1332_v46, %v1332_v46  ;;  %vm882_vm8 = vcmask 785408  }
  0x24   :  { %s2632_s30 = smov 94   ;;  %vm1005_vm9 = vcmask 777216   ;;  %vm1128_vm10 = vcmask 769024  }
  0x25   :  { %247 = vrot.lane.b32.xlu0 %v2701_v12, %s2618_s3  ;;  %318 = vrot.lane.b32.xlu1 %v2704_v13, %s2618_s3 }
  0x29   :  { %382 = vrot.lane.b32.xlu0 %v2701_v12, %s2619_s16  ;;  %443 = vrot.lane.b32.xlu1 %v2704_v13, %s2619_s16 }
  0x2d   :  { %116 = vrot.lane.b32.xlu0 %v105_v16, %s2617_s15  ;;  %130 = vrot.lane.b32.xlu1 %v111_v17, %s2617_s15 }
  0x31   :  { %505 = vrot.lane.b32.xlu0 %v2701_v12, %s2620_s17  ;;  %566 = vrot.lane.b32.xlu1 %v2704_v13, %s2620_s17 }
  0x35   :  { %628 = vrot.lane.b32.xlu0 %v2701_v12, %s2621_s18  ;;  %689 = vrot.lane.b32.xlu1 %v2704_v13, %s2621_s18 }
  0x39   :  { %751 = vrot.lane.b32.xlu0 %v2701_v12, %s2622_s19  ;;  %812 = vrot.lane.b32.xlu1 %v2704_v13, %s2622_s19 }
  0x3d   :  { %874 = vrot.lane.b32.xlu0 %v2701_v12, %s2623_s20  ;;  %935 = vrot.lane.b32.xlu1 %v2704_v13, %s2623_s20 }
  0x41   :  { %997 = vrot.lane.b32.xlu0 %v2701_v12, %s2624_s21  ;;  %1058 = vrot.lane.b32.xlu1 %v2704_v13, %s2624_s21 }
  0x91   :  { %v129_v18 = vpop.permute.xlu1 %128  ;;  %v115_v19 = vpop.permute.xlu0 %114 }
  0x92   :  { %v134_v20 = vsel %vm118_vm0, 0, %v129_v18  ;;  %v123_v21 = vsel %vm118_vm0, 0, %v115_v19 }
  0x93   :  { %251 = vrot.lane.b32.xlu0 %v134_v20, %s2625_s22  ;;  %322 = vrot.lane.b32.xlu1 %v123_v21, %s2625_s22  ;;  %v142_v30 = vsel %vm141_vm1, %v134_v20, 0  ;;  %v191_v31 = vsel %vm141_vm1, %v123_v21, 0 }
  0x97   :  { %v2728_v22 = vpop.permute.xlu0 %247  ;;  %v2730_v23 = vpop.permute.xlu1 %318  ;;  %384 = vrot.lane.b32.xlu0 %v134_v20, %s2626_s23  ;;  %445 = vrot.lane.b32.xlu1 %v123_v21, %s2626_s23 }
  0x9b   :  { %v2734_v24 = vpop.permute.xlu0 %382  ;;  %v2736_v25 = vpop.permute.xlu1 %443  ;;  %507 = vrot.lane.b32.xlu0 %v134_v20, %s2621_s18  ;;  %568 = vrot.lane.b32.xlu1 %v123_v21, %s2621_s18 }
  0x9f   :  { %v117_v26 = vpop.permute.xlu0 %116  ;;  %v131_v27 = vpop.permute.xlu1 %130  ;;  %630 = vrot.lane.b32.xlu0 %v134_v20, %s2627_s24  ;;  %691 = vrot.lane.b32.xlu1 %v123_v21, %s2627_s24 }
  0xa0   :  { %v2741_v28 = vsel %vm118_vm0, %v115_v19, %v117_v26  ;;  %v2744_v29 = vsel %vm118_vm0, %v129_v18, %v131_v27  ;;  %v136_v33 = vsel %vm118_vm0, %v131_v27, 0  ;;  %v125_v34 = vsel %vm118_vm0, %v117_v26, 0 }
  0xa1   :  { %2443 = vmatprep.subr.msk.bf16.mxu1 %vm141_vm1, %v2741_v28  ;;  %2441 = vmatprep.subr.msk.bf16.mxu0 %vm141_vm1, %v2744_v29 }
  0xa2   :  { %162 = vmatpush1.bf16.msra.mxu0 %v142_v30  ;;  %211 = vmatpush1.bf16.msra.mxu1 %v191_v31 }
  0xa3   :  { %753 = vrot.lane.b32.xlu0 %v134_v20, %s2629_s25  ;;  %814 = vrot.lane.b32.xlu1 %v123_v21, %s2629_s25  ;;  %v2814_v35 = vpop.permute.xlu0 %505  ;;  %v2816_v36 = vpop.permute.xlu1 %566 }
  0xa5   :  { %2442 = vmatmul.mubr.msk.bf16.vlgmr.msra.gmra.mxu0 %vm137_vm2, %v2691_v8  ;;  %2444 = vmatmul.mubr.msk.bf16.vlgmr.msra.gmra.mxu1 %vm137_vm2, %v2696_v11 }
  0xa6   :  { %301 = vmatprep.mubr.bf16.mxu0 %v3424_v32  ;;  %371 = vmatprep.mubr.bf16.mxu1 %v3424_v32 }
  0xa7   :  { %876 = vrot.lane.b32.xlu0 %v134_v20, %s2630_s26  ;;  %937 = vrot.lane.b32.xlu1 %v123_v21, %s2630_s26  ;;  %v2822_v37 = vpop.permute.xlu0 %628  ;;  %v2824_v38 = vpop.permute.xlu1 %689 }
  0xa8   :  { %3431 = vst [vmem:[#allocation11_spill] sm:$0xff] %v2824_v38 }
  0xab   :  { %999 = vrot.lane.b32.xlu0 %v134_v20, %s2631_s29  ;;  %1060 = vrot.lane.b32.xlu1 %v123_v21, %s2631_s29  ;;  %v2831_v43 = vpop.permute.xlu0 %751  ;;  %v2833_v44 = vpop.permute.xlu1 %812 }
  0xac   :  { %3432 = vst [vmem:[#allocation12_spill] sm:$0xff] %v2833_v44 }
  0xaf   :  { %1122 = vrot.lane.b32.xlu0 %v134_v20, %s2632_s30  ;;  %1183 = vrot.lane.b32.xlu1 %v123_v21, %s2632_s30  ;;  %v2839_v49 = vpop.permute.xlu0 %874  ;;  %v2841_v50 = vpop.permute.xlu1 %935 }
  0xb0   :  { %3433 = vst [vmem:[#allocation13_spill] sm:$0xff] %v2841_v50 }
  0xb3   :  { %255 = vrot.lane.b32.xlu0 %v136_v33, %s2625_s22  ;;  %253 = vrot.lane.b32.xlu1 %v2744_v29, %s2625_s22  ;;  %v2848_v52 = vpop.permute.xlu0 %997  ;;  %v2850_v53 = vpop.permute.xlu1 %1058 }
  0xb4   :  { %3434 = vst [vmem:[#allocation14_spill] sm:$0xff] %v2850_v53 }
  0xb7   :  { %324 = vrot.lane.b32.xlu0 %v2741_v28, %s2625_s22  ;;  %326 = vrot.lane.b32.xlu1 %v125_v34, %s2625_s22 }
  0xbb   :  { %388 = vrot.lane.b32.xlu0 %v136_v33, %s2626_s23  ;;  %386 = vrot.lane.b32.xlu1 %v2744_v29, %s2626_s23 }
  0xbf   :  { %447 = vrot.lane.b32.xlu0 %v2741_v28, %s2626_s23  ;;  %449 = vrot.lane.b32.xlu1 %v125_v34, %s2626_s23 }
  0xc3   :  { %511 = vrot.lane.b32.xlu0 %v136_v33, %s2621_s18  ;;  %509 = vrot.lane.b32.xlu1 %v2744_v29, %s2621_s18 }
  0xc7   :  { %570 = vrot.lane.b32.xlu0 %v2741_v28, %s2621_s18  ;;  %572 = vrot.lane.b32.xlu1 %v125_v34, %s2621_s18 }
  0xcb   :  { %634 = vrot.lane.b32.xlu0 %v136_v33, %s2627_s24  ;;  %632 = vrot.lane.b32.xlu1 %v2744_v29, %s2627_s24 }
  0xcf   :  { %693 = vrot.lane.b32.xlu0 %v2741_v28, %s2627_s24  ;;  %695 = vrot.lane.b32.xlu1 %v125_v34, %s2627_s24 }
  0xd3   :  { %757 = vrot.lane.b32.xlu0 %v136_v33, %s2629_s25  ;;  %755 = vrot.lane.b32.xlu1 %v2744_v29, %s2629_s25 }
  0xd7   :  { %816 = vrot.lane.b32.xlu0 %v2741_v28, %s2629_s25  ;;  %818 = vrot.lane.b32.xlu1 %v125_v34, %s2629_s25 }
  0xdb   :  { %880 = vrot.lane.b32.xlu0 %v136_v33, %s2630_s26  ;;  %878 = vrot.lane.b32.xlu1 %v2744_v29, %s2630_s26 }
  0xdf   :  { %939 = vrot.lane.b32.xlu0 %v2741_v28, %s2630_s26  ;;  %941 = vrot.lane.b32.xlu1 %v125_v34, %s2630_s26 }
  0xe3   :  { %1003 = vrot.lane.b32.xlu0 %v136_v33, %s2631_s29  ;;  %1001 = vrot.lane.b32.xlu1 %v2744_v29, %s2631_s29 }
  0xe7   :  { %1062 = vrot.lane.b32.xlu0 %v2741_v28, %s2631_s29  ;;  %1064 = vrot.lane.b32.xlu1 %v125_v34, %s2631_s29 }
  0xeb   :  { %1126 = vrot.lane.b32.xlu0 %v136_v33, %s2632_s30  ;;  %1124 = vrot.lane.b32.xlu1 %v2744_v29, %s2632_s30 }
  0xef   :  { %1185 = vrot.lane.b32.xlu0 %v2741_v28, %s2632_s30  ;;  %1187 = vrot.lane.b32.xlu1 %v125_v34, %s2632_s30 }
  0xf3   :  { %1120 = vrot.lane.b32.xlu0 %v2701_v12, %s2630_s26  ;;  %1181 = vrot.lane.b32.xlu1 %v2704_v13, %s2630_s26 }
  0xf7   :  { %1338 = vrot.lane.b32.xlu0 %v1327_v42, %s2617_s15  ;;  %1340 = vrot.lane.b32.xlu1 %v1328_v45, %s2617_s15 }
  0xfb   :  { %1349 = vrot.lane.b32.xlu0 %v1334_v47, %s2617_s15  ;;  %1351 = vrot.lane.b32.xlu1 %v1335_v48, %s2617_s15 }
  0xff   :  { %1253 = vperm.xlu0 %2540, %v97_v51  }
 0x105   :  { %v252_v54 = vpop.permute.xlu0 %251  ;;  %v323_v55 = vpop.permute.xlu1 %322 }
 0x109   :  { %v385_v56 = vpop.permute.xlu0 %384  ;;  %v446_v57 = vpop.permute.xlu1 %445 }
 0x10d   :  { %v508_v58 = vpop.permute.xlu0 %507  ;;  %v569_v59 = vpop.permute.xlu1 %568 }
 0x111   :  { %v2852_v60 = vpop.permute.xlu0 %630  ;;  %v2854_v61 = vpop.permute.xlu1 %691 }
 0x115   :  { %v2856_v62 = vpop.permute.xlu0 %753  ;;  %v2858_v63 = vpop.permute.xlu1 %814 }
 0x119   :  { %v2860_v1 = vpop.permute.xlu0 %876  ;;  %v2862_v2 = vpop.permute.xlu1 %937 }
 0x11d   :  { %v2864_v3 = vpop.permute.xlu0 %999  ;;  %v2866_v4 = vpop.permute.xlu1 %1060 }
 0x121   :  { %v2868_v5 = vpop.permute.xlu0 %1122  ;;  %v2870_v6 = vpop.permute.xlu1 %1183 }
 0x125   :  { %v256_v7 = vpop.permute.xlu0 %255  ;;  %v254_v9 = vpop.permute.xlu1 %253 }
 0x126   :  { %v258_v10 = vsel %vm257_vm3, %v252_v54, %v254_v9  ;;  %v259_v11 = vsel %vm257_vm3, %v254_v9, %v256_v7 }
 0x127   :  { %v264_v12 = vsel %vm141_vm1, %v258_v10, 0  ;;  %2445 = vmatprep.subr.msk.bf16.mxu0 %vm141_vm1, %v259_v11 }
 0x128   :  { %284 = vmatpush1.bf16.msra.mxu0 %v264_v12 }
 0x129   :  { %v325_v13 = vpop.permute.xlu0 %324  ;;  %v327_v15 = vpop.permute.xlu1 %326 }
 0x12a   :  { %v328_v14 = vsel %vm257_vm3, %v323_v55, %v325_v13  ;;  %v329_v17 = vsel %vm257_vm3, %v325_v13, %v327_v15 }
 0x12b   :  { %v334_v16 = vsel %vm141_vm1, %v328_v14, 0  ;;  %2446 = vmatmul.mubr.msk.bf16.vlgmr.msra.gmra.mxu0 %vm137_vm2, %v2728_v22  ;;  %2447 = vmatprep.subr.msk.bf16.mxu1 %vm141_vm1, %v329_v17 }
 0x12c   :  { %354 = vmatpush1.bf16.msra.mxu1 %v334_v16  ;;  %434 = vmatprep.mubr.bf16.mxu0 %v3424_v32 }
 0x12d   :  { %v389_v18 = vpop.permute.xlu0 %388  ;;  %v387_v19 = vpop.permute.xlu1 %386 }
 0x12e   :  { %v391_v20 = vsel %vm390_vm4, %v385_v56, %v387_v19  ;;  %v392_v21 = vsel %vm390_vm4, %v387_v19, %v389_v18 }
 0x12f   :  { %v397_v26 = vsel %vm141_vm1, %v391_v20, 0  ;;  %2448 = vmatmul.mubr.msk.bf16.vlgmr.msra.gmra.mxu1 %vm137_vm2, %v2730_v23  ;;  %2449 = vmatprep.subr.msk.bf16.mxu0 %vm141_vm1, %v392_v21 }
 0x130   :  { %417 = vmatpush1.bf16.msra.mxu0 %v397_v26  ;;  %494 = vmatprep.mubr.bf16.mxu1 %v3424_v32 }
 0x131   :  { %v448_v27 = vpop.permute.xlu0 %447  ;;  %v450_v29 = vpop.permute.xlu1 %449 }
 0x132   :  { %v451_v28 = vsel %vm390_vm4, %v446_v57, %v448_v27  ;;  %v452_v31 = vsel %vm390_vm4, %v448_v27, %v450_v29 }
 0x133   :  { %v457_v30 = vsel %vm141_vm1, %v451_v28, 0  ;;  %2450 = vmatmul.mubr.msk.bf16.vlgmr.msra.gmra.mxu0 %vm137_vm2, %v2734_v24  ;;  %2451 = vmatprep.subr.msk.bf16.mxu1 %vm141_vm1, %v452_v31 }
 0x134   :  { %477 = vmatpush1.bf16.msra.mxu1 %v457_v30  ;;  %557 = vmatprep.mubr.bf16.mxu0 %v3424_v32 }
 0x135   :  { %v512_v33 = vpop.permute.xlu0 %511  ;;  %v510_v34 = vpop.permute.xlu1 %509 }
 0x136   :  { %v514_v39 = vsel %vm513_vm5, %v508_v58, %v510_v34  ;;  %v515_v40 = vsel %vm513_vm5, %v510_v34, %v512_v33 }
 0x137   :  { %v520_v41 = vsel %vm141_vm1, %v514_v39, 0  ;;  %2452 = vmatmul.mubr.msk.bf16.vlgmr.msra.gmra.mxu1 %vm137_vm2, %v2736_v25  ;;  %2453 = vmatprep.subr.msk.bf16.mxu0 %vm141_vm1, %v515_v40 }
 0x138   :  { %540 = vmatpush1.bf16.msra.mxu0 %v520_v41  ;;  %617 = vmatprep.mubr.bf16.mxu1 %v3424_v32 }
 0x139   :  { %v571_v42 = vpop.permute.xlu0 %570  ;;  %v573_v46 = vpop.permute.xlu1 %572 }
 0x13a   :  { %v574_v45 = vsel %vm513_vm5, %v569_v59, %v571_v42  ;;  %v575_v48 = vsel %vm513_vm5, %v571_v42, %v573_v46 }
 0x13b   :  { %v580_v47 = vsel %vm141_vm1, %v574_v45, 0  ;;  %2454 = vmatmul.mubr.msk.bf16.vlgmr.msra.gmra.mxu0 %vm137_vm2, %v2814_v35  ;;  %2455 = vmatprep.subr.msk.bf16.mxu1 %vm141_vm1, %v575_v48 }
 0x13c   :  { %600 = vmatpush1.bf16.msra.mxu1 %v580_v47  ;;  %680 = vmatprep.mubr.bf16.mxu0 %v3424_v32 }
 0x13d   :  { %v635_v51 = vpop.permute.xlu0 %634  ;;  %v633_v54 = vpop.permute.xlu1 %632 }
 0x13e   :  { %v637_v55 = vsel %vm636_vm6, %v2852_v60, %v633_v54  ;;  %v638_v56 = vsel %vm636_vm6, %v633_v54, %v635_v51 }
 0x13f   :  { %v643_v57 = vsel %vm141_vm1, %v637_v55, 0  ;;  %2456 = vmatmul.mubr.msk.bf16.vlgmr.msra.gmra.mxu1 %vm137_vm2, %v2816_v36  ;;  %2457 = vmatprep.subr.msk.bf16.mxu0 %vm141_vm1, %v638_v56 }
 0x140   :  { %663 = vmatpush1.bf16.msra.mxu0 %v643_v57  ;;  %740 = vmatprep.mubr.bf16.mxu1 %v3424_v32 }
 0x141   :  { %v694_v58 = vpop.permute.xlu0 %693  ;;  %v696_v7 = vpop.permute.xlu1 %695 }
 0x142   :  { %v697_v59 = vsel %vm636_vm6, %v2854_v61, %v694_v58  ;;  %v698_v60 = vsel %vm636_vm6, %v694_v58, %v696_v7 }
 0x143   :  { %v703_v9 = vsel %vm141_vm1, %v697_v59, 0  ;;  %2458 = vmatmul.mubr.msk.bf16.vlgmr.msra.gmra.mxu0 %vm137_vm2, %v2822_v37  ;;  %2459 = vmatprep.subr.msk.bf16.mxu1 %vm141_vm1, %v698_v60 }
 0x144   :  { %723 = vmatpush1.bf16.msra.mxu1 %v703_v9  ;;  %803 = vmatprep.mubr.bf16.mxu0 %v3424_v32 }
 0x145   :  { %v758_v10 = vpop.permute.xlu0 %757  ;;  %v756_v11 = vpop.permute.xlu1 %755 }
 0x146   :  { %v760_v12 = vsel %vm759_vm7, %v2856_v62, %v756_v11  ;;  %v761_v61 = vsel %vm759_vm7, %v756_v11, %v758_v10 }
 0x147   :  { %v766_v13 = vsel %vm141_vm1, %v760_v12, 0  ;;  %2460 = vmatmul.mubr.msk.bf16.vlgmr.msra.gmra.mxu1 %vm137_vm2, %v2824_v38  ;;  %2461 = vmatprep.subr.msk.bf16.mxu0 %vm141_vm1, %v761_v61 }
 0x148   :  { %786 = vmatpush1.bf16.msra.mxu0 %v766_v13  ;;  %863 = vmatprep.mubr.bf16.mxu1 %v3424_v32 }
 0x149   :  { %v817_v14 = vpop.permute.xlu0 %816  ;;  %v819_v16 = vpop.permute.xlu1 %818 }
 0x14a   :  { %v820_v15 = vsel %vm759_vm7, %v2858_v63, %v817_v14  ;;  %v821_v62 = vsel %vm759_vm7, %v817_v14, %v819_v16 }
 0x14b   :  { %v826_v17 = vsel %vm141_vm1, %v820_v15, 0  ;;  %2462 = vmatmul.mubr.msk.bf16.vlgmr.msra.gmra.mxu0 %vm137_vm2, %v2831_v43  ;;  %2463 = vmatprep.subr.msk.bf16.mxu1 %vm141_vm1, %v821_v62 }
 0x14c   :  { %846 = vmatpush1.bf16.msra.mxu1 %v826_v17  ;;  %926 = vmatprep.mubr.bf16.mxu0 %v3424_v32 }
 0x14d   :  { %v881_v18 = vpop.permute.xlu0 %880  ;;  %v879_v19 = vpop.permute.xlu1 %878 }
 0x14e   :  { %v883_v20 = vsel %vm882_vm8, %v2860_v1, %v879_v19  ;;  %v884_v63 = vsel %vm882_vm8, %v879_v19, %v881_v18 }
 0x14f   :  { %v889_v21 = vsel %vm141_vm1, %v883_v20, 0  ;;  %2464 = vmatmul.mubr.msk.bf16.vlgmr.msra.gmra.mxu1 %vm137_vm2, %v2833_v44  ;;  %2465 = vmatprep.subr.msk.bf16.mxu0 %vm141_vm1, %v884_v63 }
 0x150   :  { %909 = vmatpush1.bf16.msra.mxu0 %v889_v21  ;;  %986 = vmatprep.mubr.bf16.mxu1 %v3424_v32 }
 0x151   :  { %v940_v26 = vpop.permute.xlu0 %939  ;;  %v942_v28 = vpop.permute.xlu1 %941 }
 0x152   :  { %v943_v27 = vsel %vm882_vm8, %v2862_v2, %v940_v26  ;;  %v944_v1 = vsel %vm882_vm8, %v940_v26, %v942_v28 }
 0x153   :  { %v949_v29 = vsel %vm141_vm1, %v943_v27, 0  ;;  %2466 = vmatmul.mubr.msk.bf16.vlgmr.msra.gmra.mxu0 %vm137_vm2, %v2839_v49  ;;  %2467 = vmatprep.subr.msk.bf16.mxu1 %vm141_vm1, %v944_v1 }
 0x154   :  { %969 = vmatpush1.bf16.msra.mxu1 %v949_v29  ;;  %1049 = vmatprep.mubr.bf16.mxu0 %v3424_v32 }
 0x155   :  { %v1004_v30 = vpop.permute.xlu0 %1003  ;;  %v1002_v31 = vpop.permute.xlu1 %1001 }
 0x156   :  { %v1006_v33 = vsel %vm1005_vm9, %v2864_v3, %v1002_v31  ;;  %v1007_v2 = vsel %vm1005_vm9, %v1002_v31, %v1004_v30 }
 0x157   :  { %v1012_v34 = vsel %vm141_vm1, %v1006_v33, 0  ;;  %2468 = vmatmul.mubr.msk.bf16.vlgmr.msra.gmra.mxu1 %vm137_vm2, %v2841_v50  ;;  %2469 = vmatprep.subr.msk.bf16.mxu0 %vm141_vm1, %v1007_v2 }
 0x158   :  { %1032 = vmatpush1.bf16.msra.mxu0 %v1012_v34  ;;  %1109 = vmatprep.mubr.bf16.mxu1 %v3424_v32 }
 0x159   :  { %v1063_v39 = vpop.permute.xlu0 %1062  ;;  %v1065_v41 = vpop.permute.xlu1 %1064 }
 0x15a   :  { %v1066_v40 = vsel %vm1005_vm9, %v2866_v4, %v1063_v39  ;;  %v1067_v3 = vsel %vm1005_vm9, %v1063_v39, %v1065_v41 }
 0x15b   :  { %v1072_v42 = vsel %vm141_vm1, %v1066_v40, 0  ;;  %2470 = vmatmul.mubr.msk.bf16.vlgmr.msra.gmra.mxu0 %vm137_vm2, %v2848_v52  ;;  %2471 = vmatprep.subr.msk.bf16.mxu1 %vm141_vm1, %v1067_v3 }
 0x15c   :  { %1092 = vmatpush1.bf16.msra.mxu1 %v1072_v42  ;;  %1172 = vmatprep.mubr.bf16.mxu0 %v3424_v32 }
 0x15d   :  { %v1127_v45 = vpop.permute.xlu0 %1126  ;;  %v1125_v46 = vpop.permute.xlu1 %1124 }
 0x15e   :  { %v1129_v47 = vsel %vm1128_vm10, %v2868_v5, %v1125_v46  ;;  %v1130_v4 = vsel %vm1128_vm10, %v1125_v46, %v1127_v45 }
 0x15f   :  { %v1135_v48 = vsel %vm141_vm1, %v1129_v47, 0  ;;  %2472 = vmatmul.mubr.msk.bf16.vlgmr.msra.gmra.mxu1 %vm137_vm2, %v2850_v53  ;;  %2473 = vmatprep.subr.msk.bf16.mxu0 %vm141_vm1, %v1130_v4 }
 0x160   :  { %1155 = vmatpush1.bf16.msra.mxu0 %v1135_v48  ;;  %1232 = vmatprep.mubr.bf16.mxu1 %v3424_v32 }
 0x161   :  { %v1186_v51 = vpop.permute.xlu0 %1185  ;;  %v1188_v55 = vpop.permute.xlu1 %1187 }
 0x162   :  { %v1189_v54 = vsel %vm1128_vm10, %v2870_v6, %v1186_v51  ;;  %v1190_v5 = vsel %vm1128_vm10, %v1186_v51, %v1188_v55 }
 0x163   :  { %v1195_v56 = vsel %vm141_vm1, %v1189_v54, 0  ;;  %2475 = vmatprep.subr.msk.bf16.mxu1 %vm141_vm1, %v1190_v5 }
 0x164   :  { %1215 = vmatpush1.bf16.msra.mxu1 %v1195_v56 }
 0x165   :  { %v181_v57 = vpop.f32.mrf.mxu0  ;;  %v2988_v58 = vpop.permute.xlu0 %1120 }
 0x166   :  { %v230_v59 = vpop.f32.mrf.mxu1  ;;  %v2990_v7 = vpop.permute.xlu1 %1181  ;;  %2474 = vmatmul.mubr.msk.bf16.vlgmr.msra.gmra.mxu0 %vm137_vm2, %v2988_v58 }
 0x167   :  { %3435 = vst [vmem:[#allocation15_spill] sm:$0xff] %v2990_v7  ;;  %v2994_v9 = vadd.f32 %v230_v59, %v181_v57  ;;  %v183_v6 = vpop.f32.mrf.mxu0  ;;  %1308 = vmatprep.mubr.bf16.mxu0 %v3424_v32  ;;  %2476 = vmatmul.mubr.msk.bf16.vlgmr.msra.gmra.mxu1 %vm137_vm2, %v2990_v7 }
 0x168   :  { %v232_v60 = vpop.f32.mrf.mxu1  ;;  %1395 = vmatprep.mubr.bf16.mxu1 %v3424_v32 }
 0x169   :  { %v2999_v10 = vadd.f32 %v232_v60, %v183_v6  ;;  %v185_v11 = vpop.f32.mrf.mxu0  ;;  %v1339_v12 = vpop.permute.xlu0 %1338 }
 0x16a   :  { %v234_v61 = vpop.f32.mrf.mxu1  ;;  %v1341_v13 = vpop.permute.xlu1 %1340  ;;  %v3014_v21 = vsel %vm118_vm0, 0, %v1339_v12 }
 0x16b   :  { %v186_v14 = vpop.f32.mrf.mxu0  ;;  %v3010_v63 = vsel %vm118_vm0, %v1339_v12, %v1341_v13  ;;  %v1346_v26 = vsel %vm118_vm0, %v1341_v13, 0 }
 0x16c   :  { %v235_v15 = vpop.f32.mrf.mxu1 }
 0x16d   :  { %v1350_v16 = vpop.permute.xlu0 %1349 }
 0x16e   :  { %v1355_v17 = vsel %vm118_vm0, 0, %v1350_v16  ;;  %v1352_v62 = vpop.permute.xlu1 %1351 }
 0x16f   :  { %v1353_v18 = vsel %vm118_vm0, %v1350_v16, %v1352_v62  ;;  %v1357_v19 = vsel %vm118_vm0, %v1352_v62, 0  ;;  %1454 = vrot.lane.b32.xlu1 %v1355_v17, %s2625_s22  ;;  %v1358_v20 = vsel %vm141_vm1, %v1355_v17, 0 }
 0x170   :  { %1458 = vrot.lane.b32.xlu0 %v1357_v19, %s2625_s22  ;;  %2479 = vmatprep.subr.msk.bf16.mxu1 %vm141_vm1, %v1353_v18 }
 0x171   :  { %1378 = vmatpush1.bf16.msra.mxu1 %v1358_v20 }
 0x173   :  { %1456 = vrot.lane.b32.xlu1 %v1353_v18, %s2625_s22 }
 0x174   :  { %1513 = vrot.lane.b32.xlu0 %v3010_v63, %s2625_s22  ;;  %2480 = vmatmul.mubr.msk.bf16.vlgmr.msra.gmra.mxu1 %vm137_vm2, %v2691_v8  ;;  %v99_v8 = vld [vmem:[%s3422_s6] sm:$0xf] }
 0x175   :  { %1500 = vmatprep.mubr.bf16.mxu1 %v3424_v32 }
 0x177   :  { %1511 = vrot.lane.b32.xlu1 %v3014_v21, %s2625_s22 }
 0x178   :  { %1568 = vrot.lane.b32.xlu0 %v1355_v17, %s2626_s23 }
 0x17a   :  { %v3084_v27 = vpop.permute.xlu0 %1253 }
 0x17b   :  { %1515 = vrot.lane.b32.xlu1 %v1346_v26, %s2625_s22 }
 0x17c   :  { %1572 = vrot.lane.b32.xlu0 %v1357_v19, %s2626_s23 }
 0x17f   :  { %1570 = vrot.lane.b32.xlu1 %v1353_v18, %s2626_s23 }
 0x180   :  { %1625 = vrot.lane.b32.xlu0 %v3010_v63, %s2626_s23 }
 0x183   :  { %1623 = vrot.lane.b32.xlu1 %v3014_v21, %s2626_s23 }
 0x184   :  { %1680 = vrot.lane.b32.xlu0 %v1355_v17, %s2621_s18 }
 0x187   :  { %1627 = vrot.lane.b32.xlu1 %v1346_v26, %s2626_s23 }
 0x188   :  { %1684 = vrot.lane.b32.xlu0 %v1357_v19, %s2621_s18 }
 0x18b   :  { %1682 = vrot.lane.b32.xlu1 %v1353_v18, %s2621_s18 }
 0x18c   :  { %1737 = vrot.lane.b32.xlu0 %v3010_v63, %s2621_s18 }
 0x18f   :  { %1735 = vrot.lane.b32.xlu1 %v3014_v21, %s2621_s18 }
 0x190   :  { %1792 = vrot.lane.b32.xlu0 %v1355_v17, %s2627_s24 }
 0x193   :  { %1739 = vrot.lane.b32.xlu1 %v1346_v26, %s2621_s18 }
 0x194   :  { %1796 = vrot.lane.b32.xlu0 %v1357_v19, %s2627_s24 }
 0x197   :  { %1794 = vrot.lane.b32.xlu1 %v1353_v18, %s2627_s24 }
 0x198   :  { %1849 = vrot.lane.b32.xlu0 %v3010_v63, %s2627_s24 }
 0x19b   :  { %1847 = vrot.lane.b32.xlu1 %v3014_v21, %s2627_s24 }
 0x19c   :  { %1904 = vrot.lane.b32.xlu0 %v1355_v17, %s2629_s25 }
 0x19f   :  { %1851 = vrot.lane.b32.xlu1 %v1346_v26, %s2627_s24 }
 0x1a0   :  { %1908 = vrot.lane.b32.xlu0 %v1357_v19, %s2629_s25 }
 0x1a3   :  { %1906 = vrot.lane.b32.xlu1 %v1353_v18, %s2629_s25 }
 0x1a4   :  { %1961 = vrot.lane.b32.xlu0 %v3010_v63, %s2629_s25 }
 0x1a7   :  { %1959 = vrot.lane.b32.xlu1 %v3014_v21, %s2629_s25 }
 0x1a8   :  { %2016 = vrot.lane.b32.xlu0 %v1355_v17, %s2630_s26 }
 0x1ab   :  { %1963 = vrot.lane.b32.xlu1 %v1346_v26, %s2629_s25 }
 0x1ac   :  { %2020 = vrot.lane.b32.xlu0 %v1357_v19, %s2630_s26 }
 0x1af   :  { %2018 = vrot.lane.b32.xlu1 %v1353_v18, %s2630_s26 }
 0x1b0   :  { %2073 = vrot.lane.b32.xlu0 %v3010_v63, %s2630_s26 }
 0x1b3   :  { %2071 = vrot.lane.b32.xlu1 %v3014_v21, %s2630_s26 }
 0x1b4   :  { %2128 = vrot.lane.b32.xlu0 %v1355_v17, %s2631_s29 }
 0x1b7   :  { %2075 = vrot.lane.b32.xlu1 %v1346_v26, %s2630_s26 }
 0x1b8   :  { %2132 = vrot.lane.b32.xlu0 %v1357_v19, %s2631_s29 }
 0x1bb   :  { %2130 = vrot.lane.b32.xlu1 %v1353_v18, %s2631_s29 }
 0x1bc   :  { %2185 = vrot.lane.b32.xlu0 %v3010_v63, %s2631_s29 }
 0x1bf   :  { %2183 = vrot.lane.b32.xlu1 %v3014_v21, %s2631_s29 }
 0x1c0   :  { %2240 = vrot.lane.b32.xlu0 %v1355_v17, %s2632_s30 }
 0x1c3   :  { %2187 = vrot.lane.b32.xlu1 %v1346_v26, %s2631_s29 }
 0x1c4   :  { %2244 = vrot.lane.b32.xlu0 %v1357_v19, %s2632_s30 }
 0x1c7   :  { %2242 = vrot.lane.b32.xlu1 %v1353_v18, %s2632_s30 }
 0x1c8   :  { %2297 = vrot.lane.b32.xlu0 %v3010_v63, %s2632_s30 }
 0x1cb   :  { %2295 = vrot.lane.b32.xlu1 %v3014_v21, %s2632_s30 }
 0x1cc   :  { %1264 = vperm.xlu0 %2540, %v99_v8  }
 0x1cf   :  { %2299 = vrot.lane.b32.xlu1 %v1346_v26, %s2632_s30 }
 0x1e1   :  { %v1455_v28 = vpop.permute.xlu1 %1454 }
 0x1e2   :  { %v1459_v29 = vpop.permute.xlu0 %1458 }
 0x1e5   :  { %v1457_v1 = vpop.permute.xlu1 %1456 }
 0x1e6   :  { %v1514_v30 = vpop.permute.xlu0 %1513  ;;  %v1460_v31 = vsel %vm257_vm3, %v1455_v28, %v1457_v1  ;;  %v1461_v33 = vsel %vm257_vm3, %v1457_v1, %v1459_v29 }
 0x1e7   :  { %v1463_v2 = vsel %vm141_vm1, %v1460_v31, 0  ;;  %2483 = vmatprep.subr.msk.bf16.mxu1 %vm141_vm1, %v1461_v33 }
 0x1e8   :  { %1483 = vmatpush1.bf16.msra.mxu1 %v1463_v2 }
 0x1e9   :  { %v1512_v34 = vpop.permute.xlu1 %1511 }
 0x1ea   :  { %v1569_v39 = vpop.permute.xlu0 %1568  ;;  %v3091_v40 = vsel %vm257_vm3, %v1512_v34, %v1514_v30 }
 0x1eb   :  { %2484 = vmatmul.mubr.msk.bf16.vlgmr.msra.gmra.mxu1 %vm137_vm2, %v2728_v22  ;;  %v3095_v41 = vpop.f32.mrf.mxu0 }
 0x1ec   :  { %1614 = vmatprep.mubr.bf16.mxu1 %v3424_v32 }
 0x1ed   :  { %v1516_v42 = vpop.permute.xlu1 %1515  ;;  %v3098_v3 = vpop.f32.mrf.mxu0 }
 0x1ee   :  { %v1573_v45 = vpop.permute.xlu0 %1572  ;;  %v3101_v46 = vsel %vm257_vm3, %v1514_v30, %v1516_v42 }
 0x1ef   :  { %v307_v47 = vpop.f32.mrf.mxu0  ;;  %v3103_v4 = vpop.f32.mrf.mxu1 }
 0x1f1   :  { %v1571_v48 = vpop.permute.xlu1 %1570  ;;  %v308_v51 = vpop.f32.mrf.mxu0 }
 0x1f2   :  { %v1626_v54 = vpop.permute.xlu0 %1625  ;;  %v1574_v55 = vsel %vm390_vm4, %v1569_v39, %v1571_v48  ;;  %v1575_v22 = vsel %vm390_vm4, %v1571_v48, %v1573_v45  ;;  %v3108_v5 = vpop.f32.mrf.mxu1 }
 0x1f3   :  { %v1577_v56 = vsel %vm141_vm1, %v1574_v55, 0  ;;  %2487 = vmatprep.subr.msk.bf16.mxu1 %vm141_vm1, %v1575_v22  ;;  %v3111_v57 = vpop.f32.mrf.mxu0 }
 0x1f4   :  { %1597 = vmatpush1.bf16.msra.mxu1 %v1577_v56  ;;  %v377_v59 = vpop.f32.mrf.mxu1 }
 0x1f5   :  { %v1624_v6 = vpop.permute.xlu1 %1623  ;;  %v3113_v60 = vpop.f32.mrf.mxu0 }
 0x1f6   :  { %v1681_v11 = vpop.permute.xlu0 %1680  ;;  %v3116_v12 = vsel %vm390_vm4, %v1624_v6, %v1626_v54  ;;  %v378_v61 = vpop.f32.mrf.mxu1 }
 0x1f7   :  { %2488 = vmatmul.mubr.msk.bf16.vlgmr.msra.gmra.mxu1 %vm137_vm2, %v2734_v24  ;;  %v440_v13 = vpop.f32.mrf.mxu0 }
 0x1f8   :  { %1726 = vmatprep.mubr.bf16.mxu1 %v3424_v32  ;;  %v3121_v14 = vpop.f32.mrf.mxu1 }
 0x1f9   :  { %v1628_v15 = vpop.permute.xlu1 %1627  ;;  %v441_v16 = vpop.f32.mrf.mxu0 }
 0x1fa   :  { %v1685_v17 = vpop.permute.xlu0 %1684  ;;  %v3124_v62 = vsel %vm390_vm4, %v1626_v54, %v1628_v15  ;;  %v3126_v18 = vpop.f32.mrf.mxu1 }
 0x1fb   :  { %v3128_v19 = vpop.f32.mrf.mxu0 }
 0x1fc   :  { %v500_v20 = vpop.f32.mrf.mxu1 }
 0x1fd   :  { %v1683_v26 = vpop.permute.xlu1 %1682  ;;  %v3130_v8 = vpop.f32.mrf.mxu0 }
 0x1fe   :  { %v1738_v24 = vpop.permute.xlu0 %1737  ;;  %v1686_v28 = vsel %vm513_vm5, %v1681_v11, %v1683_v26  ;;  %v1687_v29 = vsel %vm513_vm5, %v1683_v26, %v1685_v17  ;;  %v501_v30 = vpop.f32.mrf.mxu1 }
 0x1ff   :  { %v1689_v1 = vsel %vm141_vm1, %v1686_v28, 0  ;;  %2491 = vmatprep.subr.msk.bf16.mxu1 %vm141_vm1, %v1687_v29  ;;  %v563_v31 = vpop.f32.mrf.mxu0 }
 0x200   :  { %1709 = vmatpush1.bf16.msra.mxu1 %v1689_v1  ;;  %v3136_v33 = vpop.f32.mrf.mxu1 }
 0x201   :  { %v1736_v2 = vpop.permute.xlu1 %1735  ;;  %v564_v34 = vpop.f32.mrf.mxu0 }
 0x202   :  { %v1793_v39 = vpop.permute.xlu0 %1792  ;;  %v3139_v42 = vsel %vm513_vm5, %v1736_v2, %v1738_v24  ;;  %v3141_v45 = vpop.f32.mrf.mxu1 }
 0x203   :  { %2492 = vmatmul.mubr.msk.bf16.vlgmr.msra.gmra.mxu1 %vm137_vm2, %v2814_v35  ;;  %v3145_v47 = vpop.f32.mrf.mxu0 }
 0x204   :  { %1838 = vmatprep.mubr.bf16.mxu1 %v3424_v32  ;;  %v623_v48 = vpop.f32.mrf.mxu1 }
 0x205   :  { %v1740_v51 = vpop.permute.xlu1 %1739  ;;  %v3148_v54 = vpop.f32.mrf.mxu0 }
 0x206   :  { %v1797_v55 = vpop.permute.xlu0 %1796  ;;  %v3151_v22 = vsel %vm513_vm5, %v1738_v24, %v1740_v51  ;;  %v624_v56 = vpop.f32.mrf.mxu1 }
 0x207   :  { %v686_v59 = vpop.f32.mrf.mxu0 }
 0x208   :  { %v3153_v6 = vpop.f32.mrf.mxu1 }
 0x209   :  { %v1795_v11 = vpop.permute.xlu1 %1794  ;;  %v687_v61 = vpop.f32.mrf.mxu0 }
 0x20a   :  { %v1850_v13 = vpop.permute.xlu0 %1849  ;;  %v1798_v35 = vsel %vm636_vm6, %v1793_v39, %v1795_v11  ;;  %v1799_v15 = vsel %vm636_vm6, %v1795_v11, %v1797_v55  ;;  %v3158_v17 = vpop.f32.mrf.mxu1 }
 0x20b   :  { %v1801_v16 = vsel %vm141_vm1, %v1798_v35, 0  ;;  %2495 = vmatprep.subr.msk.bf16.mxu1 %vm141_vm1, %v1799_v15  ;;  %v3161_v20 = vpop.f32.mrf.mxu0 }
 0x20c   :  { %1821 = vmatpush1.bf16.msra.mxu1 %v1801_v16  ;;  %v746_v26 = vpop.f32.mrf.mxu1 }
 0x20d   :  { %v1848_v24 = vpop.permute.xlu1 %1847  ;;  %v3163_v28 = vpop.f32.mrf.mxu0 }
 0x20e   :  { %v1905_v29 = vpop.permute.xlu0 %1904  ;;  %v3166_v1 = vsel %vm636_vm6, %v1848_v24, %v1850_v13  ;;  %v747_v30 = vpop.f32.mrf.mxu1 }
 0x20f   :  { %2496 = vmatmul.mubr.msk.bf16.vlgmr.msra.gmra.mxu1 %vm137_vm2, %v2822_v37  ;;  %v809_v31 = vpop.f32.mrf.mxu0 }
 0x210   :  { %1950 = vmatprep.mubr.bf16.mxu1 %v3424_v32  ;;  %v865_v2 = vpop.f32.mrf.mxu1 }
 0x211   :  { %v1852_v34 = vpop.permute.xlu1 %1851  ;;  %v810_v39 = vpop.f32.mrf.mxu0 }
 0x212   :  { %v1909_v48 = vpop.permute.xlu0 %1908  ;;  %v3172_v51 = vsel %vm636_vm6, %v1850_v13, %v1852_v34  ;;  %v3174_v55 = vpop.f32.mrf.mxu1  ;;  %v57_v13 = vand.u32 127, %v56_v0 }
 0x213   :  { %v928_v56 = vpop.f32.mrf.mxu0 }
 0x214   :  { %v869_v59 = vpop.f32.mrf.mxu1 }
 0x215   :  { %v1907_v11 = vpop.permute.xlu1 %1906  ;;  %v930_v61 = vpop.f32.mrf.mxu0 }
 0x216   :  { %v1962_v35 = vpop.permute.xlu0 %1961  ;;  %v1910_v15 = vsel %vm759_vm7, %v1905_v29, %v1907_v11  ;;  %v1911_v37 = vsel %vm759_vm7, %v1907_v11, %v1909_v48  ;;  %v870_v26 = vpop.f32.mrf.mxu1  ;;  %v3436_v48 = vmov 0   ;;  %v63_v11 = vand.u32 15, %v57_v13 }
 0x217   :  { %v1913_v16 = vsel %vm141_vm1, %v1910_v15, 0  ;;  %2499 = vmatprep.subr.msk.bf16.mxu1 %vm141_vm1, %v1911_v37  ;;  %v932_v24 = vpop.f32.mrf.mxu0 }
 0x218   :  { %1933 = vmatpush1.bf16.msra.mxu1 %v1913_v16  ;;  %v988_v30 = vpop.f32.mrf.mxu1  ;;  %v58_v16 = vadd.s32 128, %v57_v13  ;;  %vm83_vm11 = vcmp.ne.s32.totalorder %v63_v11, 0  ;;  %vm3219_vm13 = vcmp.ne.s32.totalorder %v63_v11, 15 }
 0x219   :  { %v1960_v31 = vpop.permute.xlu1 %1959  ;;  %v933_v34 = vpop.f32.mrf.mxu0 }
 0x21a   :  { %v2017_v39 = vpop.permute.xlu0 %2016  ;;  %v3182_v59 = vsel %vm759_vm7, %v1960_v31, %v1962_v35  ;;  %v990_v32 = vpop.f32.mrf.mxu1  ;;  %v620_v31 = vadd.f32 %v3136_v33, %v3128_v19  ;;  %v70_v50 = vand.u32 15, %v58_v16  ;;  %v2633_v16 = vmov 0.0  }
 0x21b   :  { %2500 = vmatmul.mubr.msk.bf16.vlgmr.msra.gmra.mxu1 %vm137_vm2, %v2831_v43  ;;  %v1051_v29 = vpop.f32.mrf.mxu0 }
 0x21c   :  { %2062 = vmatprep.mubr.bf16.mxu1 %v3436_v48  ;;  %v992_v15 = vpop.f32.mrf.mxu1  ;;  %vm3210_vm12 = vcmp.ne.s32.totalorder %v70_v50, 0  ;;  %vm3238_vm14 = vcmp.ne.s32.totalorder %v70_v50, 15 }
 0x21d   :  { %v1964_v37 = vpop.permute.xlu1 %1963  ;;  %v1053_v26 = vpop.f32.mrf.mxu0 }
 0x21e   :  { %v2021_v0 = vpop.permute.xlu0 %2020  ;;  %v3188_v24 = vsel %vm759_vm7, %v1962_v35, %v1964_v37  ;;  %v993_v34 = vpop.f32.mrf.mxu1  ;;  %v622_v35 = vadd.f32 %v3141_v45, %v3130_v8  ;;  %v989_v37 = vadd.f32 %v988_v30, %v928_v56 }
 0x21f   :  { %v1055_v7 = vpop.f32.mrf.mxu0  ;;  %v991_v34 = vadd.f32 %v990_v32, %v930_v61 }
 0x220   :  { %v1111_v53 = vpop.f32.mrf.mxu1  ;;  %v743_v7 = vadd.f32 %v3153_v6, %v3145_v47  ;;  %v745_v47 = vadd.f32 %v3158_v17, %v3148_v54  ;;  %v866_v6 = vadd.f32 %v865_v2, %v3161_v20  ;;  %v627_v32 = vadd.f32 %v622_v35, %v2999_v10 }
 0x221   :  { %v2019_v43 = vpop.permute.xlu1 %2018  ;;  %v1056_v44 = vpop.f32.mrf.mxu0  ;;  %v1112_v8 = vadd.f32 %v1111_v53, %v1051_v29  ;;  %v376_v54 = vadd.f32 %v3108_v5, %v3098_v3  ;;  %v497_v17 = vadd.f32 %v3121_v14, %v3111_v57  ;;  %v868_v20 = vadd.f32 %v3174_v55, %v3163_v28 }
 0x222   :  { %v3192_v38 = vpop.permute.xlu0 %2073  ;;  %v2022_v15 = vsel %vm882_vm8, %v2017_v39, %v2019_v43  ;;  %v2023_v13 = vsel %vm882_vm8, %v2019_v43, %v2021_v0  ;;  %v1113_v33 = vpop.f32.mrf.mxu1  ;;  %v3202_v44 = vsel %vm83_vm11, 1.0, %v2633_v16  ;;  %v374_v39 = vadd.f32 %v3103_v4, %v3095_v41 }
 0x223   :  { %v2025_v19 = vsel %vm141_vm1, %v2022_v15, 0  ;;  %2503 = vmatprep.subr.msk.bf16.mxu1 %vm141_vm1, %v2023_v13  ;;  %v626_v0 = vadd.f32 %v620_v31, %v2994_v9  ;;  %v1114_v10 = vadd.f32 %v1113_v33, %v1053_v26  ;;  %v3234_v29 = vsel %vm3210_vm12, 1.0, %v2633_v16 }
 0x224   :  { %2045 = vmatpush1.bf16.msra.mxu1 %v2025_v19  ;;  %v1115_v45 = vpop.f32.mrf.mxu1  ;;  %v749_v53 = vadd.f32 %v743_v7, %v374_v39  ;;  %v996_v11 = vadd.f32 %v991_v34, %v627_v32  ;;  %v499_v5 = vadd.f32 %v3126_v18, %v3113_v60  ;;  %v750_v57 = vadd.f32 %v745_v47, %v376_v54 }
 0x225   :  { %v2072_v43 = vpop.permute.xlu1 %2071  ;;  %v995_v9 = vadd.f32 %v989_v37, %v626_v0  ;;  %v872_v14 = vadd.f32 %v866_v6, %v497_v17  ;;  %v3247_v7 = vsel %vm3219_vm13, 1.0, %v2633_v16  ;;  %v3252_v18 = vsel %vm3238_vm14, 1.0, %v2633_v16 }
 0x226   :  { %v2129_v30 = vpop.permute.xlu0 %2128  ;;  %v3216_v15 = vsel %vm882_vm8, %v2072_v43, %v3192_v38  ;;  %v1174_v41 = vpop.f32.mrf.mxu0  ;;  %v1118_v31 = vadd.f32 %v1112_v8, %v749_v53  ;;  %v873_v19 = vadd.f32 %v868_v20, %v499_v5  ;;  %v1119_v50 = vadd.f32 %v1114_v10, %v750_v57 }
 0x227   :  { %v1116_v4 = vpop.f32.mrf.mxu1  ;;  %2504 = vmatmul.mubr.msk.bf16.vlgmr.msra.gmra.mxu1 %vm137_vm2, %v2839_v49  ;;  %v1243_v35 = vmul.f32 %v3202_v44, %v995_v9  ;;  %v1244_v34 = vmul.f32 %v3234_v29, %v996_v11 }
 0x228   :  { %v1176_v2 = vpop.f32.mrf.mxu0  ;;  %2174 = vmatprep.mubr.bf16.mxu1 %v3436_v48 }
 0x229   :  { %v1234_v49 = vpop.f32.mrf.mxu1  ;;  %v3236_v13 = vpop.permute.xlu1 %2075  ;;  %v1245_v60 = vadd.f32 %v1243_v35, %v1118_v31  ;;  %v1246_v9 = vadd.f32 %v1244_v34, %v1119_v50  ;;  %v3284_v50 = vld [vmem:[%s3421_s5] sm:$0x3] }
 0x22a   :  { %v1235_v28 = vadd.f32 %v1234_v49, %v1174_v41  ;;  %v2133_v55 = vpop.permute.xlu0 %2132  ;;  %v1178_v26 = vpop.f32.mrf.mxu0 }
 0x22b   :  { %v1236_v37 = vpop.f32.mrf.mxu1 }
 0x22c   :  { %v1241_v33 = vadd.f32 %v1235_v28, %v872_v14  ;;  %v1237_v39 = vadd.f32 %v1236_v37, %v1176_v2  ;;  %v1179_v0 = vpop.f32.mrf.mxu0 }
 0x22d   :  { %v1238_v8 = vpop.f32.mrf.mxu1  ;;  %v2131_v45 = vpop.permute.xlu1 %2130  ;;  %v3447_v0 = vld [vmem:[#allocation15_spill] sm:$0xff] }
 0x22e   :  { %v1247_v43 = vmul.f32 %v3247_v7, %v1241_v33  ;;  %v1242_v47 = vadd.f32 %v1237_v39, %v873_v19  ;;  %v3255_v6 = vpop.permute.xlu0 %2185  ;;  %v2134_v56 = vsel %vm1005_vm9, %v2129_v30, %v2131_v45  ;;  %v2135_v41 = vsel %vm1005_vm9, %v2131_v45, %v2133_v55  ;;  %v2545_v39 = vld [vmem:[%s3418_s2] sm:$0x3]  ;;  %s2634_s2 = smov [#allocation7]  }
 0x22f   :  { %v2137_v32 = vsel %vm141_vm1, %v2134_v56, 0  ;;  %v1239_v53 = vpop.f32.mrf.mxu1  ;;  %2507 = vmatprep.subr.msk.bf16.mxu1 %vm141_vm1, %v2135_v41  ;;  %v1404_v33 = vsel %vm141_vm1, %v3014_v21, 0  ;;  %v1744_v21 = vsel %vm141_vm1, %v3139_v42, 0  ;;  %s2424_s0 = sshll.u32 %s2634_s2, 4  ;;  %s2425_s0 = int_to_ptr.vmem [resolvable:$true] %s2424_s0 }
 0x230   :  { %v1249_v4 = vadd.f32 %v1247_v43, %v1245_v60  ;;  %v1248_v16 = vmul.f32 %v3252_v18, %v1242_v47  ;;  %2157 = vmatpush1.bf16.msra.mxu1 %v2137_v32  ;;  %s2586_s13 = scalar_lea.vmem %s2425_s0, 256  ;;  %p2591_p11 = scmp.lt.s32.totalorder %s2425_s0, %s2425_s0 }
 0x231   :  { %v2184_v61 = vpop.permute.xlu1 %2183  ;;  %p2587_p10 = scmp.ne.s32.totalorder %s2425_s0, %s2586_s13  ;;  %p2592_p12 = scmp.lt.s32.totalorder %s2586_s13, %s2586_s13 }
 0x232   :  { %v1250_v54 = vadd.f32 %v1248_v16, %v1246_v9  ;;  %v3264_v17 = vsel %vm1005_vm9, %v2184_v61, %v3255_v6  ;;  %v1256_v30 = vadd.f32 %v3084_v27, %v1249_v4  ;;  %v2241_v20 = vpop.permute.xlu0 %2240 }
 0x233   :  { %2508 = vmatmul.mubr.msk.bf16.vlgmr.msra.gmra.mxu1 %vm137_vm2, %v2848_v52  ;;  %p2593_p13 = por %p2592_p12, %p2591_p11 }
 0x234   :  { %v1257_v10 = vadd.f32 %v3084_v27, %v1250_v54  ;;  %v1258_v2 = vmax.f32 %v1256_v30, 0.0  ;;  %2286 = vmatprep.mubr.bf16.mxu1 %v3436_v48  ;;  %v3271_v11 = vpop.f32.mrf.mxu1 }
 0x235   :  { %v2188_v31 = vpop.permute.xlu1 %2187  ;;  %p2594_p0 = pnand %p2593_p13, %p2587_p10 }
 0x236   :  { %v1259_v49 = vmax.f32 %v1257_v10, 0.0  ;;  %v1260_v3 = vpack.c.bf16 %v1258_v2, %v1258_v2  ;;  %v3273_v5 = vpop.f32.mrf.mxu1  ;;  %v2245_v28 = vpop.permute.xlu0 %2244  ;;  %v2190_v42 = vsel %vm1005_vm9, %v3255_v6, %v2188_v31 }
 0x238   :  { %v1261_v57 = vpack.c.bf16 %v1259_v49, %v1259_v49  ;;  %v1401_v14 = vpop.f32.mrf.mxu1  ;;  %v1271_v35 = vsel %vm141_vm1, %v1260_v3, 0 }
 0x239   :  { %v2243_v55 = vpop.permute.xlu1 %2242 }
 0x23a   :  { %2477 = vmatprep.subr.msk.bf16.mxu0 %vm141_vm1, %v1261_v57  ;;  %v2246_v52 = vsel %vm1128_vm10, %v2241_v20, %v2243_v55  ;;  %v2247_v26 = vsel %vm1128_vm10, %v2243_v55, %v2245_v28  ;;  %v1402_v37 = vpop.f32.mrf.mxu1 }
 0x23b   :  { %v2249_v19 = vsel %vm141_vm1, %v2246_v52, 0  ;;  %1291 = vmatpush1.bf16.msra.mxu0 %v1271_v35  ;;  %2511 = vmatprep.subr.msk.bf16.mxu1 %vm141_vm1, %v2247_v26 }
 0x23c   :  { %2481 = vmatprep.subr.msk.bf16.mxu0 %vm141_vm1, %v3010_v63  ;;  %2269 = vmatpush1.bf16.msra.mxu1 %v2249_v19  ;;  %v1520_v63 = vsel %vm141_vm1, %v3091_v40, 0  ;;  %v3443_v40 = vld [vmem:[#allocation11_spill] sm:$0xff] }
 0x23e   :  { %2478 = vmatmul.mubr.msk.bf16.vlgmr.msra.gmra.mxu0 %vm137_vm2, %v3284_v50 }
 0x23f   :  { %1424 = vmatpush1.bf16.msra.mxu0 %v1404_v33  ;;  %2512 = vmatmul.mubr.msk.bf16.vlgmr.msra.gmra.mxu1 %vm137_vm2, %v2988_v58  ;;  %v1632_v58 = vsel %vm141_vm1, %v3116_v12, 0  ;;  %v2296_v12 = vpop.permute.xlu1 %2295 }
 0x240   :  { %2485 = vmatprep.subr.msk.bf16.mxu0 %vm141_vm1, %v3101_v46  ;;  %1441 = vmatprep.mubr.bf16.mxu0 %v3436_v48  ;;  %v2078_v46 = vsel %vm882_vm8, %v3192_v38, %v3236_v13  ;;  %v3446_v13 = vld [vmem:[#allocation14_spill] sm:$0xff] }
 0x241   :  { %2404 = vmatprep.mubr.bf16.mxu1 %v3436_v48 }
 0x243   :  { %v2300_v38 = vpop.permute.xlu1 %2299 }
 0x246   :  { %2482 = vmatmul.mubr.msk.bf16.vlgmr.msra.gmra.mxu0 %vm137_vm2, %v2545_v39 }
 0x247   :  { %1540 = vmatpush1.bf16.msra.mxu0 %v1520_v63  ;;  %1557 = vmatprep.mubr.bf16.mxu0 %v3436_v48 }
 0x248   :  { %2489 = vmatprep.subr.msk.bf16.mxu0 %vm141_vm1, %v3124_v62  ;;  %v3444_v62 = vld [vmem:[#allocation12_spill] sm:$0xff] }
 0x24e   :  { %2486 = vmatmul.mubr.msk.bf16.vlgmr.msra.gmra.mxu0 %vm137_vm2, %v2730_v23  ;;  %v1856_v23 = vsel %vm141_vm1, %v3166_v1, 0  ;;  %v2298_v1 = vpop.permute.xlu0 %2297 }
 0x24f   :  { %1652 = vmatpush1.bf16.msra.mxu0 %v1632_v58  ;;  %1669 = vmatprep.mubr.bf16.mxu0 %v3436_v48 }
 0x250   :  { %2493 = vmatprep.subr.msk.bf16.mxu0 %vm141_vm1, %v3151_v22  ;;  %v2192_v22 = vsel %vm141_vm1, %v3264_v17, 0 }
 0x252   :  { %v3379_v26 = vpop.permute.xlu0 %1264 }
 0x256   :  { %2490 = vmatmul.mubr.msk.bf16.vlgmr.msra.gmra.mxu0 %vm137_vm2, %v2736_v25  ;;  %v1968_v25 = vsel %vm141_vm1, %v3182_v59, 0  ;;  %v2302_v59 = vsel %vm1128_vm10, %v2298_v1, %v2300_v38 }
 0x257   :  { %1764 = vmatpush1.bf16.msra.mxu0 %v1744_v21  ;;  %1781 = vmatprep.mubr.bf16.mxu0 %v3436_v48 }
 0x258   :  { %2497 = vmatprep.subr.msk.bf16.mxu0 %vm141_vm1, %v3172_v51  ;;  %v3445_v51 = vld [vmem:[#allocation13_spill] sm:$0xff] }
 0x25e   :  { %2494 = vmatmul.mubr.msk.bf16.vlgmr.msra.gmra.mxu0 %vm137_vm2, %v2816_v36  ;;  %v2080_v36 = vsel %vm141_vm1, %v3216_v15, 0 }
 0x25f   :  { %1876 = vmatpush1.bf16.msra.mxu0 %v1856_v23  ;;  %1893 = vmatprep.mubr.bf16.mxu0 %v3436_v48 }
 0x260   :  { %2501 = vmatprep.subr.msk.bf16.mxu0 %vm141_vm1, %v3188_v24  ;;  %v2301_v24 = vsel %vm1128_vm10, %v2296_v12, %v2298_v1 }
 0x261   :  { %v2304_v15 = vsel %vm141_vm1, %v2301_v24, 0 }
 0x266   :  { %2498 = vmatmul.mubr.msk.bf16.vlgmr.msra.gmra.mxu0 %vm137_vm2, %v3443_v40 }
 0x267   :  { %1988 = vmatpush1.bf16.msra.mxu0 %v1968_v25  ;;  %2005 = vmatprep.mubr.bf16.mxu0 %v3436_v48 }
 0x268   :  { %2505 = vmatprep.subr.msk.bf16.mxu0 %vm141_vm1, %v2078_v46 }
 0x26e   :  { %2502 = vmatmul.mubr.msk.bf16.vlgmr.msra.gmra.mxu0 %vm137_vm2, %v3444_v62 }
 0x26f   :  { %2100 = vmatpush1.bf16.msra.mxu0 %v2080_v36  ;;  %2117 = vmatprep.mubr.bf16.mxu0 %v3436_v48 }
 0x270   :  { %2509 = vmatprep.subr.msk.bf16.mxu0 %vm141_vm1, %v2190_v42 }
 0x276   :  { %2506 = vmatmul.mubr.msk.bf16.vlgmr.msra.gmra.mxu0 %vm137_vm2, %v3445_v51 }
 0x277   :  { %2212 = vmatpush1.bf16.msra.mxu0 %v2192_v22  ;;  %2229 = vmatprep.mubr.bf16.mxu0 %v3436_v48 }
 0x278   :  { %2513 = vmatprep.subr.msk.bf16.mxu0 %vm141_vm1, %v2302_v59 }
 0x27e   :  { %2510 = vmatmul.mubr.msk.bf16.vlgmr.msra.gmra.mxu0 %vm137_vm2, %v3446_v13 }
 0x27f   :  { %2324 = vmatpush1.bf16.msra.mxu0 %v2304_v15  ;;  %2341 = vmatprep.mubr.bf16.mxu0 %v3436_v48 }
 0x286   :  { %2514 = vmatmul.mubr.msk.bf16.vlgmr.msra.gmra.mxu0 %vm137_vm2, %v3447_v0 }
 0x2ab   :  { %v3359_v34 = vpop.f32.mrf.mxu1 }
 0x2ad   :  { %v3361_v60 = vpop.f32.mrf.mxu1 }
 0x2af   :  { %v1506_v8 = vpop.f32.mrf.mxu1 }
 0x2b1   :  { %v1507_v45 = vpop.f32.mrf.mxu1 }
 0x2b7   :  { %v3363_v43 = vpop.f32.mrf.mxu1 }
 0x2b9   :  { %v3365_v47 = vpop.f32.mrf.mxu1 }
 0x2bb   :  { %v1620_v6 = vpop.f32.mrf.mxu1 }
 0x2bd   :  { %v1621_v56 = vpop.f32.mrf.mxu1 }
 0x2c3   :  { %v1728_v41 = vpop.f32.mrf.mxu1 }
 0x2c5   :  { %v3367_v32 = vpop.f32.mrf.mxu1 }
 0x2c7   :  { %v1732_v53 = vpop.f32.mrf.mxu1 }
 0x2c9   :  { %v1733_v48 = vpop.f32.mrf.mxu1 }
 0x2cf   :  { %v1840_v9 = vpop.f32.mrf.mxu1 }
 0x2d1   :  { %v3369_v4 = vpop.f32.mrf.mxu1 }
 0x2d3   :  { %v1844_v16 = vpop.f32.mrf.mxu1 }
 0x2d5   :  { %v1845_v61 = vpop.f32.mrf.mxu1 }
 0x2db   :  { %v3371_v54 = vpop.f32.mrf.mxu1 }
 0x2dd   :  { %v3373_v17 = vpop.f32.mrf.mxu1 }
 0x2df   :  { %v1956_v30 = vpop.f32.mrf.mxu1 }
 0x2e1   :  { %v1957_v20 = vpop.f32.mrf.mxu1 }
 0x2e7   :  { %v2064_v10 = vpop.f32.mrf.mxu1 }
 0x2e9   :  { %v2066_v2 = vpop.f32.mrf.mxu1 }
 0x2eb   :  { %v2068_v31 = vpop.f32.mrf.mxu1 }
 0x2ed   :  { %v2069_v49 = vpop.f32.mrf.mxu1 }
 0x2f3   :  { %v2176_v3 = vpop.f32.mrf.mxu1 }
 0x2f5   :  { %v3375_v57 = vpop.f32.mrf.mxu1 }
 0x2f7   :  { %v2180_v14 = vpop.f32.mrf.mxu1 }
 0x2f9   :  { %v2181_v28 = vpop.f32.mrf.mxu1 }
 0x2fe   :  { %v1310_v55 = vpop.f32.mrf.mxu0 }
 0x2ff   :  { %v3377_v52 = vpop.f32.mrf.mxu1  ;;  %v1311_v37 = vadd.f32 %v1310_v55, %v3379_v26 }
 0x300   :  { %v1312_v35 = vpop.f32.mrf.mxu0 }
 0x301   :  { %v1313_v19 = vadd.f32 %v1312_v35, %v3379_v26  ;;  %v3383_v33 = vpop.f32.mrf.mxu1 }
 0x302   :  { %v1314_v63 = vpop.f32.mrf.mxu0 }
 0x303   :  { %v1319_v39 = vcombine.low %v1311_v37, %v1313_v19  ;;  %v2292_v58 = vpop.f32.mrf.mxu1 }
 0x304   :  { %v1315_v21 = vpop.f32.mrf.mxu0 }
 0x305   :  { %1321 = vst [vmem:[#allocation7] sm:$0xff] %v1319_v39  ;;  %v2293_v23 = vpop.f32.mrf.mxu1 }
 0x306   :  { %v1443_v25 = vpop.f32.mrf.mxu0 }
 0x307   :  { %v1444_v35 = vadd.f32 %v1443_v25, %v3271_v11 }
 0x308   :  { %v1445_v40 = vpop.f32.mrf.mxu0 }
 0x309   :  { %v1446_v39 = vadd.f32 %v1445_v40, %v3273_v5 }
 0x30a   :  { %v1447_v46 = vpop.f32.mrf.mxu0 }
 0x30c   :  { %v1448_v36 = vpop.f32.mrf.mxu0 }
 0x30e   :  { %v1559_v12 = vpop.f32.mrf.mxu0 }
 0x30f   :  { %v1560_v58 = vadd.f32 %v1559_v12, %v3359_v34 }
 0x310   :  { %v1561_v62 = vpop.f32.mrf.mxu0 }
 0x312   :  { %v1563_v42 = vpop.f32.mrf.mxu0 }
 0x314   :  { %v1564_v38 = vpop.f32.mrf.mxu0 }
 0x316   :  { %v1671_v22 = vpop.f32.mrf.mxu0 }
 0x317   :  { %v1672_v11 = vadd.f32 %v1671_v22, %v3363_v43 }
 0x318   :  { %v1673_v1 = vpop.f32.mrf.mxu0 }
 0x31a   :  { %v1675_v51 = vpop.f32.mrf.mxu0 }
 0x31c   :  { %v1676_v59 = vpop.f32.mrf.mxu0 }
 0x31e   :  { %v1783_v24 = vpop.f32.mrf.mxu0 }
 0x31f   :  { %v1784_v28 = vadd.f32 %v1783_v24, %v1728_v41  ;;  %v1562_v41 = vadd.f32 %v1561_v62, %v3361_v60 }
 0x320   :  { %v1785_v15 = vpop.f32.mrf.mxu0 }
 0x321   :  { %v1786_v37 = vadd.f32 %v1785_v15, %v3367_v32  ;;  %v1790_v46 = vadd.f32 %v1784_v28, %v1444_v35 }
 0x322   :  { %v1787_v13 = vpop.f32.mrf.mxu0 }
 0x324   :  { %v1788_v0 = vpop.f32.mrf.mxu0 }
 0x326   :  { %v1895_v8 = vpop.f32.mrf.mxu0 }
 0x327   :  { %v1896_v19 = vadd.f32 %v1895_v8, %v1840_v9 }
 0x328   :  { %v1897_v45 = vpop.f32.mrf.mxu0 }
 0x329   :  { %v1898_v21 = vadd.f32 %v1897_v45, %v3369_v4  ;;  %v1902_v25 = vadd.f32 %v1896_v19, %v1560_v58  ;;  %v1674_v4 = vadd.f32 %v1673_v1, %v3365_v47 }
 0x32a   :  { %v1899_v6 = vpop.f32.mrf.mxu0 }
 0x32b   :  { %v1903_v40 = vadd.f32 %v1898_v21, %v1562_v41 }
 0x32c   :  { %v1900_v56 = vpop.f32.mrf.mxu0 }
 0x32e   :  { %v2007_v53 = vpop.f32.mrf.mxu0 }
 0x32f   :  { %v2008_v36 = vadd.f32 %v2007_v53, %v3371_v54 }
 0x330   :  { %v2009_v48 = vpop.f32.mrf.mxu0 }
 0x331   :  { %v2010_v32 = vadd.f32 %v2009_v48, %v3373_v17  ;;  %v2014_v51 = vadd.f32 %v2008_v36, %v1672_v11 }
 0x332   :  { %v2011_v16 = vpop.f32.mrf.mxu0 }
 0x333   :  { %v2015_v60 = vadd.f32 %v2010_v32, %v1674_v4 }
 0x334   :  { %v2012_v61 = vpop.f32.mrf.mxu0 }
 0x336   :  { %v2119_v30 = vpop.f32.mrf.mxu0 }
 0x337   :  { %v2120_v63 = vadd.f32 %v2119_v30, %v2064_v10  ;;  %v1791_v10 = vadd.f32 %v1786_v37, %v1446_v39 }
 0x338   :  { %v2121_v20 = vpop.f32.mrf.mxu0 }
 0x339   :  { %v2122_v42 = vadd.f32 %v2121_v20, %v2066_v2  ;;  %v2126_v5 = vadd.f32 %v2120_v63, %v1790_v46 }
 0x33a   :  { %v2123_v31 = vpop.f32.mrf.mxu0 }
 0x33b   :  { %v2127_v54 = vadd.f32 %v2122_v42, %v1791_v10  ;;  %v2352_v43 = vmul.f32 %v3202_v44, %v2126_v5 }
 0x33c   :  { %v2124_v49 = vpop.f32.mrf.mxu0 }
 0x33e   :  { %v2231_v14 = vpop.f32.mrf.mxu0 }
 0x33f   :  { %v2232_v38 = vadd.f32 %v2231_v14, %v2176_v3 }
 0x340   :  { %v2233_v55 = vpop.f32.mrf.mxu0 }
 0x341   :  { %v2234_v34 = vadd.f32 %v2233_v55, %v3375_v57  ;;  %v2238_v2 = vadd.f32 %v2232_v38, %v1902_v25  ;;  %v2353_v57 = vmul.f32 %v3234_v29, %v2127_v54 }
 0x342   :  { %v2235_v23 = vpop.f32.mrf.mxu0 }
 0x343   :  { %v2239_v17 = vadd.f32 %v2234_v34, %v1903_v40  ;;  %v2354_v15 = vadd.f32 %v2352_v43, %v2238_v2 }
 0x344   :  { %v2236_v9 = vpop.f32.mrf.mxu0 }
 0x345   :  { %v2355_v0 = vadd.f32 %v2353_v57, %v2239_v17 }
 0x346   :  { %v2343_v12 = vpop.f32.mrf.mxu0 }
 0x347   :  { %v2344_v3 = vadd.f32 %v2343_v12, %v3377_v52 }
 0x348   :  { %v2345_v62 = vpop.f32.mrf.mxu0 }
 0x349   :  { %v2350_v22 = vadd.f32 %v2344_v3, %v2014_v51  ;;  %v2346_v59 = vadd.f32 %v2345_v62, %v3383_v33 }
 0x34a   :  { %v2347_v24 = vpop.f32.mrf.mxu0 }
 0x34b   :  { %v2356_v47 = vmul.f32 %v3247_v7, %v2350_v22  ;;  %v2351_v1 = vadd.f32 %v2346_v59, %v2015_v60 }
 0x34c   :  { %v2348_v13 = vpop.f32.mrf.mxu0 }
 0x34d   :  { %v2358_v8 = vadd.f32 %v2356_v47, %v2354_v15  ;;  %v2357_v52 = vmul.f32 %v3252_v18, %v2351_v1 }
 0x34f   :  { %v2359_v45 = vadd.f32 %v2357_v52, %v2355_v0  ;;  %v2360_v6 = vadd.f32 %v2358_v8, %v3084_v27 }
 0x351   :  { %v2361_v44 = vadd.f32 %v2359_v45, %v3084_v27  ;;  %v2362_v56 = vmax.f32 %v2360_v6, 0.0 }
 0x353   :  { %v2363_v53 = vmax.f32 %v2361_v44, 0.0  ;;  %v2364_v33 = vpack.c.bf16 %v2362_v56, %v2362_v56 }
 0x355   :  { %v2365_v48 = vpack.c.bf16 %v2363_v53, %v2363_v53  ;;  %v2367_v29 = vsel %vm141_vm1, %v2364_v33, 0 }
 0x357   :  { %2515 = vmatprep.subr.msk.bf16.mxu1 %vm141_vm1, %v2365_v48 }
 0x358   :  { %2387 = vmatpush1.bf16.msra.mxu1 %v2367_v29 }
 0x35b   :  { %2516 = vmatmul.mubr.msk.bf16.vlgmr.msra.gmra.mxu1 %vm137_vm2, %v3284_v50 }
 0x41b   :  { %v2406_v7 = vpop.f32.mrf.mxu1 }
 0x41c   :  { %v2407_v18 = vadd.f32 %v2406_v7, %v3379_v26 }
 0x41d   :  { %v2408_v16 = vpop.f32.mrf.mxu1 }
 0x41e   :  { %v2409_v27 = vadd.f32 %v2408_v16, %v3379_v26 }
 0x41f   :  { %v2410_v61 = vpop.f32.mrf.mxu1 }
 0x420   :  { %v2415_v30 = vcombine.low %v2407_v18, %v2409_v27 }
 0x421   :  { %v2411_v20 = vpop.f32.mrf.mxu1 }
 0x422   :  { %2418 = vst [vmem:[#allocation7 + $0x8] sm:$0xff] %v2415_v30 }
 0x423   :  { %2597 = shalt.err (!%p2594_p0)
}
 0x424   :  { %2430 = dma.vmem_to_hbm [thread:$0]  %s2425_s0, 256, %s3423_s7, [#allocation4], %s2613_s27, %s2613_s27, %s2614_s28  }
 0x425   :  { %2610 = dma.done.wait [#allocation4], 256  }
 0x426   :  { %2611 = vsyncadd [#allocation4], 4294967040 }
 0x427   :  { %2434 = vsyncpa [#allocation3], 1 }
 0x428   :  { %2435 = vsyncpa [#allocation6], 1 }
 0x429   :  { %2436 = vsyncpa [#allocation4], 1 }

</bundles_post_ra>
